<compile_context>
chip_gen: v7x
topology: tpu7x:2x2x1
jax: 0.10.0
libtpu: 0.0.40
codegen_flags: <defaults>
</compile_context>

<pallas_src>
import math

import jax
import jax.numpy as jnp
from jax.experimental import pallas as pl
from jax.experimental.pallas import tpu as pltpu


IMAGE_SIZE = (1, 28, 28)
IN_DIM = IMAGE_SIZE[0] * IMAGE_SIZE[1] * IMAGE_SIZE[2]      # 784
LAYER_DIMS = [IN_DIM, 512, 256, 128, 64, 32, 1]             # logical module dims

LANE = 128
SUBLANE = 16            # bf16 sublane packing; batch tiles kept multiples of this
MAX_TILE_B = 1024       # VMEM-safe even on v7x (64 MiB physical / 32 MiB scoped)


def _round_up(x, m):
    return (x + m - 1) // m * m


# Lane-padded dims: the input feature dim (784) is deliberately left UNPADDED
# (a block whose last dim equals the full array dim is legal; Mosaic pads the
# VMEM layout internally), so no padded activation copy ever hits HBM.  All
# later dims are rounded up to 128 lanes: [784, 512, 256, 128, 128, 128, 128].
PAD_DIMS = [IN_DIM] + [_round_up(d, LANE) for d in LAYER_DIMS[1:]]


def _gelu(x):
    # tanh-approx GELU: tanh executes on the EUP slot, freeing the VALU slots
    # that the exact erf polynomial was saturating.  Note GELU(0) == 0 exactly,
    # so zero-padded lanes stay identically zero through the network.
    # TODO(synk): switch back to the exact erf form if bit-level GELU parity
    # with nn.GELU() is required (costs ~1.5-2x on v6e/v7x).
    return jax.nn.gelu(x, approximate=True)


def _discriminator_kernel(
    x_ref,
    w1_ref, b1_ref, w2_ref, b2_ref, w3_ref, b3_ref,
    w4_ref, b4_ref, w5_ref, b5_ref, w6_ref, b6_ref,
    out_ref,
):
    def linear(h_bf16, w_ref, b_ref):
        # bf16 MXU matmul with f32 accumulation, then f32 bias add.
        return (
            jnp.dot(h_bf16, w_ref[...], preferred_element_type=jnp.float32)
            + b_ref[...]
        )

    # Input streams in as raw f32 (no wrapper-side pad/cast pass over HBM);
    # the bf16 cast for the MXU happens here, hidden under the matmuls.
    h = x_ref[...].astype(jnp.bfloat16)                      # [TILE_B, 784]
    for w_ref, b_ref in (
        (w1_ref, b1_ref), (w2_ref, b2_ref), (w3_ref, b3_ref),
        (w4_ref, b4_ref), (w5_ref, b5_ref),
    ):
        h = _gelu(linear(h, w_ref, b_ref)).astype(jnp.bfloat16)

    logits = linear(h, w6_ref, b6_ref)                       # f32 [TILE_B, 128]
    # Lane-dense (128-wide) bf16 store (halves output writeback); only column 0
    # is the real logit and is sliced in the wrapper.
    out_ref[...] = jax.nn.sigmoid(logits).astype(out_ref.dtype)


def _pad_params(params):
    """Weights -> bf16 [pin, pout], biases -> f32 [1, pout], zero-padded to the
    lane-aligned dims in PAD_DIMS (exact zeros, so padded lanes stay zero)."""
    padded = []
    for idx, (w, b) in enumerate(params):
        pin, pout = PAD_DIMS[idx], PAD_DIMS[idx + 1]
        fin, fout = w.shape
        w = w.astype(jnp.float32)
        b = b.reshape(1, -1).astype(jnp.float32)
        if (fin, fout) != (pin, pout):
            w = jnp.zeros((pin, pout), jnp.float32).at[:fin, :fout].set(w)
            b = jnp.zeros((1, pout), jnp.float32).at[:, :fout].set(b)
        padded.append((w.astype(jnp.bfloat16), b))
    return padded


def _select_tile_b(batch, requested=None):
    """Batch tile: multiple of 16 (bf16 sublane packing), capped at MAX_TILE_B
    for VMEM, and sized so large batches get >= 2 grid steps (keeps both v7x
    TensorCores busy via the "parallel" batch axis)."""
    if requested is not None:
        tb = min(_round_up(max(requested, 1), SUBLANE), MAX_TILE_B)
    else:
        tb = min(_round_up(pl.cdiv(max(batch, 1), 2), SUBLANE), MAX_TILE_B)
    if tb >= batch:
        tb = batch            # single tile == full batch dim (legal for any B)
    return max(tb, 1)


def discriminator_forward(image, params, *, tile_b=None):
    """image: [B, 1, 28, 28] f32 (NCHW).  Returns probabilities [B, 1] f32."""
    batch = image.shape[0]
    x = image.reshape(batch, -1).astype(jnp.float32)          # torch .view(B, -1)

    tb = _select_tile_b(batch, tile_b)
    padded_b = _round_up(batch, tb)
    if padded_b != batch:
        # Only the batch remainder (< one tile of zero rows) is padded; the
        # feature dim stays at 784 so no padded activation copy hits HBM.
        x = jnp.pad(x, ((0, padded_b - batch), (0, 0)))

    padded_params = _pad_params(params)
    flat_params = []
    for w, b in padded_params:
        flat_params.append(w)
        flat_params.append(b)

    grid = (padded_b // tb,)

    # Activations stream over the batch grid; weights/biases use a constant
    # block index so Pallas keeps them VMEM-resident across grid steps.
    x_spec = pl.BlockSpec((tb, IN_DIM), lambda i: (i, 0))
    out_spec = pl.BlockSpec((tb, PAD_DIMS[-1]), lambda i: (i, 0))
    param_specs = []
    for w, b in padded_params:
        param_specs.append(pl.BlockSpec(w.shape, lambda i: (0, 0)))
        param_specs.append(pl.BlockSpec(b.shape, lambda i: (0, 0)))

    # Advisory cost estimate (logical, unpadded dims).
    flops = 2 * batch * sum(LAYER_DIMS[i] * LAYER_DIMS[i + 1] for i in range(6))
    transcendentals = batch * sum(LAYER_DIMS[1:])             # tanh + sigmoid
    bytes_accessed = (
        x.size * 4
        + sum(w.size * 2 + b.size * 4 for w, b in padded_params)
        + padded_b * PAD_DIMS[-1] * 2
    )

    out_padded = pl.pallas_call(
        _discriminator_kernel,
        out_shape=jax.ShapeDtypeStruct((padded_b, PAD_DIMS[-1]), jnp.bfloat16),
        grid=grid,
        in_specs=[x_spec] + param_specs,
        out_specs=out_spec,
        compiler_params=pltpu.CompilerParams(
            dimension_semantics=("parallel",),     # batch split across v7x TCs
            vmem_limit_bytes=32 * 1024 * 1024,     # footprint <~16 MiB at tb=1024
        ),
        cost_estimate=pl.CostEstimate(
            flops=flops,
            transcendentals=transcendentals,
            bytes_accessed=bytes_accessed,
        ),
    )(x, *flat_params)

    return out_padded[:batch, :1].astype(jnp.float32)


def init_params(key):
    """Deterministic init matching the nn.Linear shapes of the module.

    Weights stored as [in_features, out_features] (transposed vs torch), f32."""
    params = []
    for i in range(len(LAYER_DIMS) - 1):
        fan_in, fan_out = LAYER_DIMS[i], LAYER_DIMS[i + 1]
        key, wk, bk = jax.random.split(key, 3)
        bound = 1.0 / math.sqrt(fan_in)
        w = jax.random.uniform(
            wk, (fan_in, fan_out), dtype=jnp.float32, minval=-bound, maxval=bound
        )
        b = jax.random.uniform(
            bk, (1, fan_out), dtype=jnp.float32, minval=-bound, maxval=bound
        )
        params.append((w, b))
    return params


if __name__ == "__main__":
    key = jax.random.PRNGKey(0)
    pkey, xkey = jax.random.split(key)

    params = init_params(pkey)
    # NCHW image batch, consistent with the PyTorch module's expected input.
    image = jax.random.normal(xkey, (8, *IMAGE_SIZE), dtype=jnp.float32)

    prob = discriminator_forward(image, params)
    jax.block_until_ready(prob)

    assert prob.shape == (8, 1), prob.shape
    assert bool(jnp.all((prob >= 0.0) & (prob <= 1.0)))

    print("KERNEL_OK")
</pallas_src>

<mosaic_0001>
module attributes {stable_mosaic.version = 11 : i64} {
  func.func @_discriminator_kernel(%arg0: i32, %arg1: memref<8x784xf32, #tpu.memory_space<vmem>>, %arg2: memref<784x512xbf16, #tpu.memory_space<vmem>>, %arg3: memref<1x512xf32, #tpu.memory_space<vmem>>, %arg4: memref<512x256xbf16, #tpu.memory_space<vmem>>, %arg5: memref<1x256xf32, #tpu.memory_space<vmem>>, %arg6: memref<256x128xbf16, #tpu.memory_space<vmem>>, %arg7: memref<1x128xf32, #tpu.memory_space<vmem>>, %arg8: memref<128x128xbf16, #tpu.memory_space<vmem>>, %arg9: memref<1x128xf32, #tpu.memory_space<vmem>>, %arg10: memref<128x128xbf16, #tpu.memory_space<vmem>>, %arg11: memref<1x128xf32, #tpu.memory_space<vmem>>, %arg12: memref<128x128xbf16, #tpu.memory_space<vmem>>, %arg13: memref<1x128xf32, #tpu.memory_space<vmem>>, %arg14: memref<8x128xbf16, #tpu.memory_space<vmem>>) attributes {dimension_semantics = [#tpu.dimension_semantics<parallel>], iteration_bounds = array<i64: 1>, scalar_prefetch = 0 : i64, scratch_operands = 0 : i64, tpu.core_type = #tpu.core_type<tc>, window_params = [{transform_indices = @transform_0, window_bounds = array<i64: 8, 784>}, {pipeline_mode = #tpu.pipeline_mode<synchronous>, transform_indices = @transform_1, window_bounds = array<i64: 784, 512>}, {pipeline_mode = #tpu.pipeline_mode<synchronous>, transform_indices = @transform_2, window_bounds = array<i64: 1, 512>}, {pipeline_mode = #tpu.pipeline_mode<synchronous>, transform_indices = @transform_3, window_bounds = array<i64: 512, 256>}, {pipeline_mode = #tpu.pipeline_mode<synchronous>, transform_indices = @transform_4, window_bounds = array<i64: 1, 256>}, {pipeline_mode = #tpu.pipeline_mode<synchronous>, transform_indices = @transform_5, window_bounds = array<i64: 256, 128>}, {pipeline_mode = #tpu.pipeline_mode<synchronous>, transform_indices = @transform_6, window_bounds = array<i64: 1, 128>}, {pipeline_mode = #tpu.pipeline_mode<synchronous>, transform_indices = @transform_7, window_bounds = array<i64: 128, 128>}, {pipeline_mode = #tpu.pipeline_mode<synchronous>, transform_indices = @transform_8, window_bounds = array<i64: 1, 128>}, {pipeline_mode = #tpu.pipeline_mode<synchronous>, transform_indices = @transform_9, window_bounds = array<i64: 128, 128>}, {pipeline_mode = #tpu.pipeline_mode<synchronous>, transform_indices = @transform_10, window_bounds = array<i64: 1, 128>}, {pipeline_mode = #tpu.pipeline_mode<synchronous>, transform_indices = @transform_11, window_bounds = array<i64: 128, 128>}, {pipeline_mode = #tpu.pipeline_mode<synchronous>, transform_indices = @transform_12, window_bounds = array<i64: 1, 128>}, {transform_indices = @transform_13, window_bounds = array<i64: 8, 128>}]} {
    %c0 = arith.constant 0 : index
    %c0_0 = arith.constant 0 : index
    %0 = vector.load %arg1[%c0, %c0_0] : memref<8x784xf32, #tpu.memory_space<vmem>>, vector<8x784xf32>
    %1 = arith.truncf %0 : vector<8x784xf32> to vector<8x784xbf16>
    %c0_1 = arith.constant 0 : index
    %c0_2 = arith.constant 0 : index
    %2 = vector.load %arg2[%c0_1, %c0_2] : memref<784x512xbf16, #tpu.memory_space<vmem>>, vector<784x512xbf16>
    %cst = arith.constant dense<0.000000e+00> : vector<8x512xf32>
    %3 = tpu.matmul %1, %2, %cst {dimension_numbers = #tpu.dot_dimension_numbers<[1], [0], [0], [1], [0, 0, 1, 1], [], []>} : vector<8x784xbf16>, vector<784x512xbf16>, vector<8x512xf32> -> vector<8x512xf32>
    %c0_3 = arith.constant 0 : index
    %c0_4 = arith.constant 0 : index
    %4 = vector.load %arg3[%c0_3, %c0_4] : memref<1x512xf32, #tpu.memory_space<vmem>>, vector<1x512xf32>
    %5 = vector.broadcast %4 : vector<1x512xf32> to vector<8x512xf32>
    %6 = arith.addf %3, %5 : vector<8x512xf32>
    %7 = arith.mulf %6, %6 : vector<8x512xf32>
    %8 = arith.mulf %6, %7 : vector<8x512xf32>
    %cst_5 = arith.constant 4.471500e-02 : f32
    %9 = vector.broadcast %cst_5 : f32 to vector<8x512xf32>
    %10 = arith.mulf %9, %8 : vector<8x512xf32>
    %11 = arith.addf %6, %10 : vector<8x512xf32>
    %cst_6 = arith.constant 0.797884583 : f32
    %12 = vector.broadcast %cst_6 : f32 to vector<8x512xf32>
    %13 = arith.mulf %12, %11 : vector<8x512xf32>
    %14 = math.tanh %13 : vector<8x512xf32>
    %cst_7 = arith.constant 1.000000e+00 : f32
    %15 = vector.broadcast %cst_7 : f32 to vector<8x512xf32>
    %16 = arith.addf %15, %14 : vector<8x512xf32>
    %cst_8 = arith.constant 5.000000e-01 : f32
    %17 = vector.broadcast %cst_8 : f32 to vector<8x512xf32>
    %18 = arith.mulf %17, %16 : vector<8x512xf32>
    %19 = arith.mulf %6, %18 : vector<8x512xf32>
    %20 = arith.truncf %19 : vector<8x512xf32> to vector<8x512xbf16>
    %c0_9 = arith.constant 0 : index
    %c0_10 = arith.constant 0 : index
    %21 = vector.load %arg4[%c0_9, %c0_10] : memref<512x256xbf16, #tpu.memory_space<vmem>>, vector<512x256xbf16>
    %cst_11 = arith.constant dense<0.000000e+00> : vector<8x256xf32>
    %22 = tpu.matmul %20, %21, %cst_11 {dimension_numbers = #tpu.dot_dimension_numbers<[1], [0], [0], [1], [0, 0, 1, 1], [], []>} : vector<8x512xbf16>, vector<512x256xbf16>, vector<8x256xf32> -> vector<8x256xf32>
    %c0_12 = arith.constant 0 : index
    %c0_13 = arith.constant 0 : index
    %23 = vector.load %arg5[%c0_12, %c0_13] : memref<1x256xf32, #tpu.memory_space<vmem>>, vector<1x256xf32>
    %24 = vector.broadcast %23 : vector<1x256xf32> to vector<8x256xf32>
    %25 = arith.addf %22, %24 : vector<8x256xf32>
    %26 = arith.mulf %25, %25 : vector<8x256xf32>
    %27 = arith.mulf %25, %26 : vector<8x256xf32>
    %cst_14 = arith.constant 4.471500e-02 : f32
    %28 = vector.broadcast %cst_14 : f32 to vector<8x256xf32>
    %29 = arith.mulf %28, %27 : vector<8x256xf32>
    %30 = arith.addf %25, %29 : vector<8x256xf32>
    %cst_15 = arith.constant 0.797884583 : f32
    %31 = vector.broadcast %cst_15 : f32 to vector<8x256xf32>
    %32 = arith.mulf %31, %30 : vector<8x256xf32>
    %33 = math.tanh %32 : vector<8x256xf32>
    %cst_16 = arith.constant 1.000000e+00 : f32
    %34 = vector.broadcast %cst_16 : f32 to vector<8x256xf32>
    %35 = arith.addf %34, %33 : vector<8x256xf32>
    %cst_17 = arith.constant 5.000000e-01 : f32
    %36 = vector.broadcast %cst_17 : f32 to vector<8x256xf32>
    %37 = arith.mulf %36, %35 : vector<8x256xf32>
    %38 = arith.mulf %25, %37 : vector<8x256xf32>
    %39 = arith.truncf %38 : vector<8x256xf32> to vector<8x256xbf16>
    %c0_18 = arith.constant 0 : index
    %c0_19 = arith.constant 0 : index
    %40 = vector.load %arg6[%c0_18, %c0_19] : memref<256x128xbf16, #tpu.memory_space<vmem>>, vector<256x128xbf16>
    %cst_20 = arith.constant dense<0.000000e+00> : vector<8x128xf32>
    %41 = tpu.matmul %39, %40, %cst_20 {dimension_numbers = #tpu.dot_dimension_numbers<[1], [0], [0], [1], [0, 0, 1, 1], [], []>} : vector<8x256xbf16>, vector<256x128xbf16>, vector<8x128xf32> -> vector<8x128xf32>
    %c0_21 = arith.constant 0 : index
    %c0_22 = arith.constant 0 : index
    %42 = vector.load %arg7[%c0_21, %c0_22] : memref<1x128xf32, #tpu.memory_space<vmem>>, vector<1x128xf32>
    %43 = vector.broadcast %42 : vector<1x128xf32> to vector<8x128xf32>
    %44 = arith.addf %41, %43 : vector<8x128xf32>
    %45 = arith.mulf %44, %44 : vector<8x128xf32>
    %46 = arith.mulf %44, %45 : vector<8x128xf32>
    %cst_23 = arith.constant 4.471500e-02 : f32
    %47 = vector.broadcast %cst_23 : f32 to vector<8x128xf32>
    %48 = arith.mulf %47, %46 : vector<8x128xf32>
    %49 = arith.addf %44, %48 : vector<8x128xf32>
    %cst_24 = arith.constant 0.797884583 : f32
    %50 = vector.broadcast %cst_24 : f32 to vector<8x128xf32>
    %51 = arith.mulf %50, %49 : vector<8x128xf32>
    %52 = math.tanh %51 : vector<8x128xf32>
    %cst_25 = arith.constant 1.000000e+00 : f32
    %53 = vector.broadcast %cst_25 : f32 to vector<8x128xf32>
    %54 = arith.addf %53, %52 : vector<8x128xf32>
    %cst_26 = arith.constant 5.000000e-01 : f32
    %55 = vector.broadcast %cst_26 : f32 to vector<8x128xf32>
    %56 = arith.mulf %55, %54 : vector<8x128xf32>
    %57 = arith.mulf %44, %56 : vector<8x128xf32>
    %58 = arith.truncf %57 : vector<8x128xf32> to vector<8x128xbf16>
    %c0_27 = arith.constant 0 : index
    %c0_28 = arith.constant 0 : index
    %59 = vector.load %arg8[%c0_27, %c0_28] : memref<128x128xbf16, #tpu.memory_space<vmem>>, vector<128x128xbf16>
    %cst_29 = arith.constant dense<0.000000e+00> : vector<8x128xf32>
    %60 = tpu.matmul %58, %59, %cst_29 {dimension_numbers = #tpu.dot_dimension_numbers<[1], [0], [0], [1], [0, 0, 1, 1], [], []>} : vector<8x128xbf16>, vector<128x128xbf16>, vector<8x128xf32> -> vector<8x128xf32>
    %c0_30 = arith.constant 0 : index
    %c0_31 = arith.constant 0 : index
    %61 = vector.load %arg9[%c0_30, %c0_31] : memref<1x128xf32, #tpu.memory_space<vmem>>, vector<1x128xf32>
    %62 = vector.broadcast %61 : vector<1x128xf32> to vector<8x128xf32>
    %63 = arith.addf %60, %62 : vector<8x128xf32>
    %64 = arith.mulf %63, %63 : vector<8x128xf32>
    %65 = arith.mulf %63, %64 : vector<8x128xf32>
    %cst_32 = arith.constant 4.471500e-02 : f32
    %66 = vector.broadcast %cst_32 : f32 to vector<8x128xf32>
    %67 = arith.mulf %66, %65 : vector<8x128xf32>
    %68 = arith.addf %63, %67 : vector<8x128xf32>
    %cst_33 = arith.constant 0.797884583 : f32
    %69 = vector.broadcast %cst_33 : f32 to vector<8x128xf32>
    %70 = arith.mulf %69, %68 : vector<8x128xf32>
    %71 = math.tanh %70 : vector<8x128xf32>
    %cst_34 = arith.constant 1.000000e+00 : f32
    %72 = vector.broadcast %cst_34 : f32 to vector<8x128xf32>
    %73 = arith.addf %72, %71 : vector<8x128xf32>
    %cst_35 = arith.constant 5.000000e-01 : f32
    %74 = vector.broadcast %cst_35 : f32 to vector<8x128xf32>
    %75 = arith.mulf %74, %73 : vector<8x128xf32>
    %76 = arith.mulf %63, %75 : vector<8x128xf32>
    %77 = arith.truncf %76 : vector<8x128xf32> to vector<8x128xbf16>
    %c0_36 = arith.constant 0 : index
    %c0_37 = arith.constant 0 : index
    %78 = vector.load %arg10[%c0_36, %c0_37] : memref<128x128xbf16, #tpu.memory_space<vmem>>, vector<128x128xbf16>
    %cst_38 = arith.constant dense<0.000000e+00> : vector<8x128xf32>
    %79 = tpu.matmul %77, %78, %cst_38 {dimension_numbers = #tpu.dot_dimension_numbers<[1], [0], [0], [1], [0, 0, 1, 1], [], []>} : vector<8x128xbf16>, vector<128x128xbf16>, vector<8x128xf32> -> vector<8x128xf32>
    %c0_39 = arith.constant 0 : index
    %c0_40 = arith.constant 0 : index
    %80 = vector.load %arg11[%c0_39, %c0_40] : memref<1x128xf32, #tpu.memory_space<vmem>>, vector<1x128xf32>
    %81 = vector.broadcast %80 : vector<1x128xf32> to vector<8x128xf32>
    %82 = arith.addf %79, %81 : vector<8x128xf32>
    %83 = arith.mulf %82, %82 : vector<8x128xf32>
    %84 = arith.mulf %82, %83 : vector<8x128xf32>
    %cst_41 = arith.constant 4.471500e-02 : f32
    %85 = vector.broadcast %cst_41 : f32 to vector<8x128xf32>
    %86 = arith.mulf %85, %84 : vector<8x128xf32>
    %87 = arith.addf %82, %86 : vector<8x128xf32>
    %cst_42 = arith.constant 0.797884583 : f32
    %88 = vector.broadcast %cst_42 : f32 to vector<8x128xf32>
    %89 = arith.mulf %88, %87 : vector<8x128xf32>
    %90 = math.tanh %89 : vector<8x128xf32>
    %cst_43 = arith.constant 1.000000e+00 : f32
    %91 = vector.broadcast %cst_43 : f32 to vector<8x128xf32>
    %92 = arith.addf %91, %90 : vector<8x128xf32>
    %cst_44 = arith.constant 5.000000e-01 : f32
    %93 = vector.broadcast %cst_44 : f32 to vector<8x128xf32>
    %94 = arith.mulf %93, %92 : vector<8x128xf32>
    %95 = arith.mulf %82, %94 : vector<8x128xf32>
    %96 = arith.truncf %95 : vector<8x128xf32> to vector<8x128xbf16>
    %c0_45 = arith.constant 0 : index
    %c0_46 = arith.constant 0 : index
    %97 = vector.load %arg12[%c0_45, %c0_46] : memref<128x128xbf16, #tpu.memory_space<vmem>>, vector<128x128xbf16>
    %cst_47 = arith.constant dense<0.000000e+00> : vector<8x128xf32>
    %98 = tpu.matmul %96, %97, %cst_47 {dimension_numbers = #tpu.dot_dimension_numbers<[1], [0], [0], [1], [0, 0, 1, 1], [], []>} : vector<8x128xbf16>, vector<128x128xbf16>, vector<8x128xf32> -> vector<8x128xf32>
    %c0_48 = arith.constant 0 : index
    %c0_49 = arith.constant 0 : index
    %99 = vector.load %arg13[%c0_48, %c0_49] : memref<1x128xf32, #tpu.memory_space<vmem>>, vector<1x128xf32>
    %100 = vector.broadcast %99 : vector<1x128xf32> to vector<8x128xf32>
    %101 = arith.addf %98, %100 : vector<8x128xf32>
    %102 = arith.negf %101 : vector<8x128xf32>
    %103 = math.exp %102 : vector<8x128xf32>
    %cst_50 = arith.constant 1.000000e+00 : f32
    %104 = vector.broadcast %cst_50 : f32 to vector<8x128xf32>
    %105 = arith.addf %104, %103 : vector<8x128xf32>
    %106 = arith.divf %104, %105 : vector<8x128xf32>
    %107 = arith.truncf %106 : vector<8x128xf32> to vector<8x128xbf16>
    %c0_51 = arith.constant 0 : index
    %c0_52 = arith.constant 0 : index
    %108 = vector.load %arg14[%c0_51, %c0_52] : memref<8x128xbf16, #tpu.memory_space<vmem>>, vector<8x128xbf16>
    tpu.vector_store %arg14[%c0_51, %c0_52], %107 {strides = array<i32>} : memref<8x128xbf16, #tpu.memory_space<vmem>>, vector<8x128xbf16>,
    return
  }
  func.func @transform_0(%arg0: i32) -> (i32, i32) {
    %c0_i32 = arith.constant 0 : i32
    %c0_i32_0 = arith.constant 0 : i32
    return %arg0, %c0_i32 : i32, i32
  }
  func.func @transform_1(%arg0: i32) -> (i32, i32) {
    %c0_i32 = arith.constant 0 : i32
    %c0_i32_0 = arith.constant 0 : i32
    %c0_i32_1 = arith.constant 0 : i32
    return %c0_i32, %c0_i32_0 : i32, i32
  }
  func.func @transform_2(%arg0: i32) -> (i32, i32) {
    %c0_i32 = arith.constant 0 : i32
    %c0_i32_0 = arith.constant 0 : i32
    %c0_i32_1 = arith.constant 0 : i32
    return %c0_i32, %c0_i32_0 : i32, i32
  }
  func.func @transform_3(%arg0: i32) -> (i32, i32) {
    %c0_i32 = arith.constant 0 : i32
    %c0_i32_0 = arith.constant 0 : i32
    %c0_i32_1 = arith.constant 0 : i32
    return %c0_i32, %c0_i32_0 : i32, i32
  }
  func.func @transform_4(%arg0: i32) -> (i32, i32) {
    %c0_i32 = arith.constant 0 : i32
    %c0_i32_0 = arith.constant 0 : i32
    %c0_i32_1 = arith.constant 0 : i32
    return %c0_i32, %c0_i32_0 : i32, i32
  }
  func.func @transform_5(%arg0: i32) -> (i32, i32) {
    %c0_i32 = arith.constant 0 : i32
    %c0_i32_0 = arith.constant 0 : i32
    %c0_i32_1 = arith.constant 0 : i32
    return %c0_i32, %c0_i32_0 : i32, i32
  }
  func.func @transform_6(%arg0: i32) -> (i32, i32) {
    %c0_i32 = arith.constant 0 : i32
    %c0_i32_0 = arith.constant 0 : i32
    %c0_i32_1 = arith.constant 0 : i32
    return %c0_i32, %c0_i32_0 : i32, i32
  }
  func.func @transform_7(%arg0: i32) -> (i32, i32) {
    %c0_i32 = arith.constant 0 : i32
    %c0_i32_0 = arith.constant 0 : i32
    %c0_i32_1 = arith.constant 0 : i32
    return %c0_i32, %c0_i32_0 : i32, i32
  }
  func.func @transform_8(%arg0: i32) -> (i32, i32) {
    %c0_i32 = arith.constant 0 : i32
    %c0_i32_0 = arith.constant 0 : i32
    %c0_i32_1 = arith.constant 0 : i32
    return %c0_i32, %c0_i32_0 : i32, i32
  }
  func.func @transform_9(%arg0: i32) -> (i32, i32) {
    %c0_i32 = arith.constant 0 : i32
    %c0_i32_0 = arith.constant 0 : i32
    %c0_i32_1 = arith.constant 0 : i32
    return %c0_i32, %c0_i32_0 : i32, i32
  }
  func.func @transform_10(%arg0: i32) -> (i32, i32) {
    %c0_i32 = arith.constant 0 : i32
    %c0_i32_0 = arith.constant 0 : i32
    %c0_i32_1 = arith.constant 0 : i32
    return %c0_i32, %c0_i32_0 : i32, i32
  }
  func.func @transform_11(%arg0: i32) -> (i32, i32) {
    %c0_i32 = arith.constant 0 : i32
    %c0_i32_0 = arith.constant 0 : i32
    %c0_i32_1 = arith.constant 0 : i32
    return %c0_i32, %c0_i32_0 : i32, i32
  }
  func.func @transform_12(%arg0: i32) -> (i32, i32) {
    %c0_i32 = arith.constant 0 : i32
    %c0_i32_0 = arith.constant 0 : i32
    %c0_i32_1 = arith.constant 0 : i32
    return %c0_i32, %c0_i32_0 : i32, i32
  }
  func.func @transform_13(%arg0: i32) -> (i32, i32) {
    %c0_i32 = arith.constant 0 : i32
    %c0_i32_0 = arith.constant 0 : i32
    return %arg0, %c0_i32 : i32, i32
  }
}

</mosaic_0001>

<bundles_post_ra>
// kernel: tpu_custom_call.1
= control target key start
LH: loop header
LB: loop body
LE: loop exit
PB: predicated region body
PF: predicated region fallthrough
CT: control target
= control target key end

     0   :  { %18 = vsyncpa [#allocation3], 0  ;;  %s4153_s0 = inlined_call_operand.hbm [shape: f32[8,784], index: 0, kind: input, shape index: {}]   ;;  %s4154_s1 = inlined_call_operand.hbm [shape: bf16[784,512], index: 1, kind: input, shape index: {}]   ;;  %s4155_s2 = inlined_call_operand.vmem [shape: f32[1,512], index: 2, kind: input, shape index: {}]   ;;  %s4156_s3 = inlined_call_operand.hbm [shape: bf16[512,256], index: 3, kind: input, shape index: {}]   ;;  %s4157_s4 = inlined_call_operand.vmem [shape: f32[1,256], index: 4, kind: input, shape index: {}]   ;;  %s4158_s5 = inlined_call_operand.hbm [shape: bf16[256,128], index: 5, kind: input, shape index: {}]   ;;  %s4159_s6 = inlined_call_operand.vmem [shape: f32[1,128], index: 6, kind: input, shape index: {}]   ;;  %s4160_s7 = inlined_call_operand.hbm [shape: bf16[128,128], index: 7, kind: input, shape index: {}]   ;;  %s4161_s8 = inlined_call_operand.vmem [shape: f32[1,128], index: 8, kind: input, shape index: {}]   ;;  %s4162_s9 = inlined_call_operand.hbm [shape: bf16[128,128], index: 9, kind: input, shape index: {}]   ;;  %s4163_s10 = inlined_call_operand.vmem [shape: f32[1,128], index: 10, kind: input, shape index: {}]   ;;  %s4164_s11 = inlined_call_operand.hbm [shape: bf16[128,128], index: 11, kind: input, shape index: {}]   ;;  %s4165_s12 = inlined_call_operand.vmem [shape: f32[1,128], index: 12, kind: input, shape index: {}]   ;;  %s4166_s13 = inlined_call_operand.hbm [shape: bf16[8,128], index: 13, kind: output, shape index: {}]  }
   0x1   :  { %19 = vsyncpa [#allocation6], 0 }
   0x2   :  { %20 = vsyncpa [#allocation9], 0 }
   0x3   :  { %21 = vsyncpa [#allocation12], 0 }
   0x4   :  { %22 = vsyncpa [#allocation4], 0  ;;  %s3890_s25 = smov [#allocation5]   ;;  %s3704_s29 = scalar_lea.hbm %s4154_s1, 25088 }
   0x5   :  { %s38_s26 = sshll.u32 %s3890_s25, 4  ;;  %p3705_p0 = scmp.ne.s32.totalorder %s4154_s1, %s3704_s29  ;;  %s39_s26 = int_to_ptr.vmem [resolvable:$true] %s38_s26 }
   0x6   :  { %p3708_p1 = scmp.lt.u32.totalorder %s3704_s29, %s4154_s1 }
   0x8   :  { %p3710_p2 = pnand %p3708_p1, %p3705_p0 }
   0xa   :  { %3713 = shalt.err (!%p3710_p2)
}
   0xb   :  { %s3714_s17 = scalar_lea.vmem %s39_s26, 25088  ;;  %p3719_p4 = scmp.lt.s32.totalorder %s39_s26, %s39_s26 }
   0xc   :  { %p3715_p3 = scmp.ne.s32.totalorder %s39_s26, %s3714_s17  ;;  %p3720_p5 = scmp.lt.s32.totalorder %s3714_s17, %s3714_s17 }
   0xe   :  { %p3721_p6 = por %p3720_p5, %p3719_p4 }
  0x10   :  { %p3722_p7 = pnand %p3721_p6, %p3715_p3 }
  0x12   :  { %3725 = shalt.err (!%p3722_p7)
}
  0x13   :  { %s3891_s18 = smov 256   ;;  %s3892_s19 = smov 16  }
  0x14   :  { %44 = dma.hbm_to_vmem [thread:$0]  %s4154_s1, 25088, %s39_s26, [#allocation6], %s3891_s18, %s3891_s18, %s3892_s19  }
  0x15   :  { %s3893_s22 = smov [#allocation8]   ;;  %s3726_s27 = scalar_lea.hbm %s4158_s5, 2048 }
  0x16   :  { %s66_s23 = sshll.u32 %s3893_s22, 4  ;;  %p3727_p8 = scmp.ne.s32.totalorder %s4158_s5, %s3726_s27  ;;  %s67_s23 = int_to_ptr.vmem [resolvable:$true] %s66_s23 }
  0x17   :  { %p3730_p9 = scmp.lt.u32.totalorder %s3726_s27, %s4158_s5 }
  0x19   :  { %p3732_p10 = pnand %p3730_p9, %p3727_p8 }
  0x1b   :  { %3735 = shalt.err (!%p3732_p10)
}
  0x1c   :  { %s3736_s15 = scalar_lea.vmem %s67_s23, 2048  ;;  %p3741_p12 = scmp.lt.s32.totalorder %s67_s23, %s67_s23 }
  0x1d   :  { %p3737_p11 = scmp.ne.s32.totalorder %s67_s23, %s3736_s15  ;;  %p3742_p13 = scmp.lt.s32.totalorder %s3736_s15, %s3736_s15 }
  0x1f   :  { %p3743_p0 = por %p3742_p13, %p3741_p12 }
  0x21   :  { %p3744_p1 = pnand %p3743_p0, %p3737_p11 }
  0x23   :  { %3747 = shalt.err (!%p3744_p1)
}
  0x24   :  { %s3894_s1 = smov 64   ;;  %s3895_s26 = smov 4  }
  0x25   :  { %72 = dma.hbm_to_vmem [thread:$0]  %s4158_s5, 2048, %s67_s23, [#allocation9], %s3894_s1, %s3894_s1, %s3895_s26  }
  0x26   :  { %s3896_s18 = smov [#allocation11]   ;;  %s3897_s20 = smov [#allocation2]  }
  0x27   :  { %s94_s19 = sshll.u32 %s3896_s18, 4  ;;  %s29_s21 = sshll.u32 %s3897_s20, 4  ;;  %s95_s19 = int_to_ptr.vmem [resolvable:$true] %s94_s19  ;;  %s30_s21 = int_to_ptr.vmem [resolvable:$true] %s29_s21 }
  0x28   :  { %s3748_s25 = scalar_lea.hbm %s4162_s9, 1024 }
  0x29   :  { %p3749_p2 = scmp.ne.s32.totalorder %s4162_s9, %s3748_s25  ;;  %p3752_p3 = scmp.lt.u32.totalorder %s3748_s25, %s4162_s9 }
  0x2b   :  { %p3754_p4 = pnand %p3752_p3, %p3749_p2 }
  0x2d   :  { %3757 = shalt.err (!%p3754_p4)
}
  0x2e   :  { %s3758_s5 = scalar_lea.vmem %s95_s19, 1024  ;;  %p3763_p6 = scmp.lt.s32.totalorder %s95_s19, %s95_s19 }
  0x2f   :  { %p3759_p5 = scmp.ne.s32.totalorder %s95_s19, %s3758_s5  ;;  %p3764_p7 = scmp.lt.s32.totalorder %s3758_s5, %s3758_s5 }
  0x31   :  { %p3765_p8 = por %p3764_p7, %p3763_p6 }
  0x33   :  { %p3766_p9 = pnand %p3765_p8, %p3759_p5 }
  0x35   :  { %3769 = shalt.err (!%p3766_p9)
}
  0x36   :  { %100 = dma.hbm_to_vmem [thread:$0]  %s4162_s9, 1024, %s95_s19, [#allocation12], %s3894_s1, %s3894_s1, %s3895_s26  }
  0x37   :  { %s3770_s17 = scalar_lea.hbm %s4153_s0, 896 }
  0x38   :  { %p3771_p10 = scmp.ne.s32.totalorder %s4153_s0, %s3770_s17  ;;  %p3774_p11 = scmp.lt.u32.totalorder %s3770_s17, %s4153_s0 }
  0x3a   :  { %p3776_p12 = pnand %p3774_p11, %p3771_p10 }
  0x3c   :  { %3779 = shalt.err (!%p3776_p12)
}
  0x3d   :  { %s3780_s25 = scalar_lea.vmem %s30_s21, 896  ;;  %p3785_p0 = scmp.lt.s32.totalorder %s30_s21, %s30_s21 }
  0x3e   :  { %p3781_p13 = scmp.ne.s32.totalorder %s30_s21, %s3780_s25  ;;  %p3786_p1 = scmp.lt.s32.totalorder %s3780_s25, %s3780_s25 }
  0x40   :  { %p3787_p2 = por %p3786_p1, %p3785_p0 }
  0x42   :  { %p3788_p3 = pnand %p3787_p2, %p3781_p13 }
  0x44   :  { %3791 = shalt.err (!%p3788_p3)
}
  0x45   :  { %32 = dma.hbm_to_vmem [thread:$0]  %s4153_s0, 896, %s30_s21, [#allocation3]  }
  0x46   :  { %s3898_s27 = smov [#allocation7]   ;;  %s3792_s5 = scalar_lea.hbm %s4156_s3, 8192 }
  0x47   :  { %s52_s28 = sshll.u32 %s3898_s27, 4  ;;  %p3793_p4 = scmp.ne.s32.totalorder %s4156_s3, %s3792_s5  ;;  %s53_s28 = int_to_ptr.vmem [resolvable:$true] %s52_s28 }
  0x48   :  { %p3796_p5 = scmp.lt.u32.totalorder %s3792_s5, %s4156_s3 }
  0x4a   :  { %p3798_p6 = pnand %p3796_p5, %p3793_p4 }
  0x4c   :  { %3801 = shalt.err (!%p3798_p6)
}
  0x4d   :  { %s3802_s17 = scalar_lea.vmem %s53_s28, 8192  ;;  %p3807_p8 = scmp.lt.s32.totalorder %s53_s28, %s53_s28 }
  0x4e   :  { %p3803_p7 = scmp.ne.s32.totalorder %s53_s28, %s3802_s17  ;;  %p3808_p9 = scmp.lt.s32.totalorder %s3802_s17, %s3802_s17 }
  0x50   :  { %p3809_p10 = por %p3808_p9, %p3807_p8 }
  0x52   :  { %p3810_p11 = pnand %p3809_p10, %p3803_p7 }
  0x54   :  { %3813 = shalt.err (!%p3810_p11)
}
  0x55   :  { %s3899_s0 = smov 128   ;;  %s3900_s21 = smov 8  }
  0x56   :  { %58 = dma.hbm_to_vmem [thread:$0]  %s4156_s3, 8192, %s53_s28, [#allocation6], %s3899_s0, %s3899_s0, %s3900_s21  }
  0x57   :  { %s3901_s22 = smov [#allocation10]   ;;  %s3902_s25 = smov [#allocation13]  }
  0x58   :  { %s80_s24 = sshll.u32 %s3901_s22, 4  ;;  %s108_s9 = sshll.u32 %s3902_s25, 4  ;;  %s81_s24 = int_to_ptr.vmem [resolvable:$true] %s80_s24  ;;  %s109_s9 = int_to_ptr.vmem [resolvable:$true] %s108_s9 }
  0x59   :  { %s3814_s29 = scalar_lea.hbm %s4160_s7, 1024 }
  0x5a   :  { %p3815_p12 = scmp.ne.s32.totalorder %s4160_s7, %s3814_s29  ;;  %p3818_p13 = scmp.lt.u32.totalorder %s3814_s29, %s4160_s7 }
  0x5c   :  { %p3820_p0 = pnand %p3818_p13, %p3815_p12 }
  0x5e   :  { %3823 = shalt.err (!%p3820_p0)
}
  0x5f   :  { %s3824_s3 = scalar_lea.vmem %s81_s24, 1024  ;;  %p3829_p2 = scmp.lt.s32.totalorder %s81_s24, %s81_s24 }
  0x60   :  { %p3825_p1 = scmp.ne.s32.totalorder %s81_s24, %s3824_s3  ;;  %p3830_p3 = scmp.lt.s32.totalorder %s3824_s3, %s3824_s3 }
  0x62   :  { %p3831_p4 = por %p3830_p3, %p3829_p2 }
  0x64   :  { %p3832_p5 = pnand %p3831_p4, %p3825_p1 }
  0x66   :  { %3835 = shalt.err (!%p3832_p5)
}
  0x67   :  { %86 = dma.hbm_to_vmem [thread:$0]  %s4160_s7, 1024, %s81_s24, [#allocation9], %s3894_s1, %s3894_s1, %s3895_s26  }
  0x68   :  { %s3836_s0 = scalar_lea.hbm %s4164_s11, 1024 }
  0x69   :  { %p3837_p6 = scmp.ne.s32.totalorder %s4164_s11, %s3836_s0  ;;  %p3840_p7 = scmp.lt.u32.totalorder %s3836_s0, %s4164_s11 }
  0x6b   :  { %p3842_p8 = pnand %p3840_p7, %p3837_p6 }
  0x6d   :  { %3845 = shalt.err (!%p3842_p8)
}
  0x6e   :  { %s3846_s25 = scalar_lea.vmem %s109_s9, 1024  ;;  %p3851_p10 = scmp.lt.s32.totalorder %s109_s9, %s109_s9 }
  0x6f   :  { %p3847_p9 = scmp.ne.s32.totalorder %s109_s9, %s3846_s25  ;;  %p3852_p11 = scmp.lt.s32.totalorder %s3846_s25, %s3846_s25 }
  0x71   :  { %p3853_p12 = por %p3852_p11, %p3851_p10 }
  0x73   :  { %p3854_p13 = pnand %p3853_p12, %p3847_p9 }
  0x75   :  { %3857 = shalt.err (!%p3854_p13)
}
  0x76   :  { %114 = dma.hbm_to_vmem [thread:$0]  %s4164_s11, 1024, %s109_s9, [#allocation12], %s3894_s1, %s3894_s1, %s3895_s26  }
  0x77   :  { %3880 = dma.done.wait [#allocation3], 896  }
  0x78   :  { %3881 = vsyncadd [#allocation3], 4294966400 }
  0x79   :  { %3882 = dma.done.wait [#allocation6], 33280  }
  0x7a   :  { %3883 = vsyncadd [#allocation6], 4294934016 }
  0x7b   :  { %3884 = dma.done.wait [#allocation9], 3072  }
  0x7c   :  { %3885 = vsyncadd [#allocation9], 4294964224 }
  0x7d   :  { %3886 = dma.done.wait [#allocation12], 2048  }
  0x7e   :  { %3887 = vsyncadd [#allocation12], 4294965248  ;;  %v3252_v0 = vld [vmem:[#allocation5 + $0x4] ss:$16 sps:$4 sm:$0xff]   ;;  %v3254_v1 = vld [vmem:[#allocation5 + $0xc] ss:$16 sps:$4 sm:$0xff]  }
  0x7f   :  { %1355 = vmatprep.subr.bf16.mxu0 %v3252_v0  ;;  %v3256_v2 = vld [vmem:[#allocation5] ss:$16 sps:$4 sm:$0xff]   ;;  %v3257_v3 = vld [vmem:[#allocation5 + $0x8] ss:$16 sps:$4 sm:$0xff]   ;;  %1519 = vmatprep.subr.bf16.mxu1 %v3254_v1  ;;  %v3258_v4 = vld [vmem:[#allocation5 + $0x24] ss:$16 sps:$4 sm:$0xff]  }
  0x80   :  { %1356 = vmatpush1.bf16.msra.mxu0 %v3256_v2  ;;  %1520 = vmatpush1.bf16.msra.mxu1 %v3257_v3  ;;  %v3260_v5 = vld [vmem:[#allocation5 + $0x2c] ss:$16 sps:$4 sm:$0xff]   ;;  %v3262_v6 = vld [vmem:[#allocation5 + $0x20] ss:$16 sps:$4 sm:$0xff]   ;;  %v3263_v7 = vld [vmem:[#allocation5 + $0x28] ss:$16 sps:$4 sm:$0xff]  }
  0x81   :  { %1357 = vmatprep.subr.bf16.mxu0 %v3258_v4  ;;  %1521 = vmatprep.subr.bf16.mxu1 %v3260_v5  ;;  %v3264_v8 = vld [vmem:[#allocation5 + $0x44] ss:$16 sps:$4 sm:$0xff]   ;;  %v3266_v9 = vld [vmem:[#allocation5 + $0x4c] ss:$16 sps:$4 sm:$0xff]   ;;  %v3268_v10 = vld [vmem:[#allocation5 + $0x40] ss:$16 sps:$4 sm:$0xff]  }
  0x82   :  { %v3269_v11 = vld [vmem:[#allocation5 + $0x48] ss:$16 sps:$4 sm:$0xff]   ;;  %v3270_v12 = vld [vmem:[#allocation5 + $0x64] ss:$16 sps:$4 sm:$0xff]   ;;  %v3272_v13 = vld [vmem:[#allocation5 + $0x6c] ss:$16 sps:$4 sm:$0xff]  }
  0x83   :  { %v3274_v14 = vld [vmem:[#allocation5 + $0x60] ss:$16 sps:$4 sm:$0xff]   ;;  %v3275_v15 = vld [vmem:[#allocation5 + $0x68] ss:$16 sps:$4 sm:$0xff]   ;;  %v3276_v16 = vld [vmem:[#allocation5 + $0x84] ss:$16 sps:$4 sm:$0xff]  }
  0x84   :  { %1358 = vmatpush1.bf16.msra.mxu0 %v3262_v6  ;;  %1522 = vmatpush1.bf16.msra.mxu1 %v3263_v7  ;;  %v3278_v17 = vld [vmem:[#allocation5 + $0x8c] ss:$16 sps:$4 sm:$0xff]   ;;  %v3280_v18 = vld [vmem:[#allocation5 + $0x80] ss:$16 sps:$4 sm:$0xff]   ;;  %v3281_v19 = vld [vmem:[#allocation5 + $0x88] ss:$16 sps:$4 sm:$0xff]  }
  0x85   :  { %1359 = vmatprep.subr.bf16.mxu0 %v3264_v8  ;;  %1523 = vmatprep.subr.bf16.mxu1 %v3266_v9  ;;  %v3282_v20 = vld [vmem:[#allocation5 + $0xa4] ss:$16 sps:$4 sm:$0xff]   ;;  %v3284_v21 = vld [vmem:[#allocation5 + $0xac] ss:$16 sps:$4 sm:$0xff]   ;;  %v3286_v22 = vld [vmem:[#allocation5 + $0xa0] ss:$16 sps:$4 sm:$0xff]  }
  0x86   :  { %v3287_v23 = vld [vmem:[#allocation5 + $0xa8] ss:$16 sps:$4 sm:$0xff]   ;;  %v3288_v24 = vld [vmem:[#allocation5 + $0xc4] ss:$16 sps:$4 sm:$0xff]   ;;  %v3290_v25 = vld [vmem:[#allocation5 + $0xcc] ss:$16 sps:$4 sm:$0xff]  }
  0x87   :  { %v3292_v26 = vld [vmem:[#allocation5 + $0xc0] ss:$16 sps:$4 sm:$0xff]   ;;  %v3293_v27 = vld [vmem:[#allocation5 + $0xc8] ss:$16 sps:$4 sm:$0xff]   ;;  %v3294_v28 = vld [vmem:[#allocation5 + $0xe4] ss:$16 sps:$4 sm:$0xff]  }
  0x88   :  { %1360 = vmatpush1.bf16.msra.mxu0 %v3268_v10  ;;  %1524 = vmatpush1.bf16.msra.mxu1 %v3269_v11  ;;  %v3296_v29 = vld [vmem:[#allocation5 + $0xec] ss:$16 sps:$4 sm:$0xff]   ;;  %v3298_v30 = vld [vmem:[#allocation5 + $0xe0] ss:$16 sps:$4 sm:$0xff]   ;;  %v3299_v31 = vld [vmem:[#allocation5 + $0xe8] ss:$16 sps:$4 sm:$0xff]  }
  0x89   :  { %1361 = vmatprep.subr.bf16.mxu0 %v3270_v12  ;;  %1525 = vmatprep.subr.bf16.mxu1 %v3272_v13  ;;  %v3300_v32 = vld [vmem:[#allocation5 + $0x104] ss:$16 sps:$4 sm:$0xff]   ;;  %v3302_v33 = vld [vmem:[#allocation5 + $0x10c] ss:$16 sps:$4 sm:$0xff]   ;;  %v3304_v34 = vld [vmem:[#allocation5 + $0x100] ss:$16 sps:$4 sm:$0xff]  }
  0x8a   :  { %v3305_v35 = vld [vmem:[#allocation5 + $0x108] ss:$16 sps:$4 sm:$0xff]   ;;  %v3306_v36 = vld [vmem:[#allocation5 + $0x124] ss:$16 sps:$4 sm:$0xff]   ;;  %v3308_v37 = vld [vmem:[#allocation5 + $0x12c] ss:$16 sps:$4 sm:$0xff]  }
  0x8b   :  { %v3310_v38 = vld [vmem:[#allocation5 + $0x120] ss:$16 sps:$4 sm:$0xff]   ;;  %v3311_v39 = vld [vmem:[#allocation5 + $0x128] ss:$16 sps:$4 sm:$0xff]   ;;  %v3312_v40 = vld [vmem:[#allocation5 + $0x144] ss:$16 sps:$4 sm:$0xff]  }
  0x8c   :  { %1362 = vmatpush1.bf16.msra.mxu0 %v3274_v14  ;;  %1526 = vmatpush1.bf16.msra.mxu1 %v3275_v15  ;;  %v3314_v41 = vld [vmem:[#allocation5 + $0x14c] ss:$16 sps:$4 sm:$0xff]   ;;  %v3316_v42 = vld [vmem:[#allocation5 + $0x140] ss:$16 sps:$4 sm:$0xff]   ;;  %v3317_v43 = vld [vmem:[#allocation5 + $0x148] ss:$16 sps:$4 sm:$0xff]  }
  0x8d   :  { %1363 = vmatprep.subr.bf16.mxu0 %v3276_v16  ;;  %1527 = vmatprep.subr.bf16.mxu1 %v3278_v17  ;;  %v3318_v44 = vld [vmem:[#allocation5 + $0x164] ss:$16 sps:$4 sm:$0xff]   ;;  %v3320_v45 = vld [vmem:[#allocation5 + $0x16c] ss:$16 sps:$4 sm:$0xff]   ;;  %v3322_v47 = vld [vmem:[#allocation5 + $0x160] ss:$16 sps:$4 sm:$0xff]  }
  0x8e   :  { %v140_v46 = vld [vmem:[#allocation2 + $0x8] sm:$0xff]  ;;  %v3323_v49 = vld [vmem:[#allocation5 + $0x168] ss:$16 sps:$4 sm:$0xff]   ;;  %v3326_v51 = vld [vmem:[#allocation5 + $0x18c] ss:$16 sps:$4 sm:$0xff]   ;;  %vm1351_vm0 = vcmask 130048  }
  0x8f   :  { %v147_v48 = vpack.c.bf16 %v140_v46, %v140_v46  ;;  %v3324_v50 = vld [vmem:[#allocation5 + $0x184] ss:$16 sps:$4 sm:$0xff]   ;;  %v3328_v52 = vld [vmem:[#allocation5 + $0x180] ss:$16 sps:$4 sm:$0xff]   ;;  %v3329_v53 = vld [vmem:[#allocation5 + $0x188] ss:$16 sps:$4 sm:$0xff]  }
  0x90   :  { %1364 = vmatpush1.bf16.msra.mxu0 %v3280_v18  ;;  %1528 = vmatpush1.bf16.msra.mxu1 %v3281_v19  ;;  %v3330_v54 = vld [vmem:[#allocation5 + $0x1a4] ss:$16 sps:$4 sm:$0xff]   ;;  %v3332_v55 = vld [vmem:[#allocation5 + $0x1ac] ss:$16 sps:$4 sm:$0xff]   ;;  %v3334_v56 = vld [vmem:[#allocation5 + $0x1a0] ss:$16 sps:$4 sm:$0xff]  }
  0x91   :  { %1365 = vmatprep.subr.bf16.mxu0 %v3282_v20  ;;  %1529 = vmatprep.subr.bf16.mxu1 %v3284_v21  ;;  %v3335_v57 = vld [vmem:[#allocation5 + $0x1a8] ss:$16 sps:$4 sm:$0xff]   ;;  %v3336_v58 = vld [vmem:[#allocation5 + $0x1c4] ss:$16 sps:$4 sm:$0xff]   ;;  %v3338_v59 = vld [vmem:[#allocation5 + $0x1cc] ss:$16 sps:$4 sm:$0xff]  }
  0x92   :  { %1387 = vmatprep.mubr.bf16.mxu0 %v147_v48  ;;  %1551 = vmatprep.mubr.bf16.mxu1 %v147_v48  ;;  %v3340_v60 = vld [vmem:[#allocation5 + $0x1c0] ss:$16 sps:$4 sm:$0xff]   ;;  %v3341_v61 = vld [vmem:[#allocation5 + $0x1c8] ss:$16 sps:$4 sm:$0xff]   ;;  %v3342_v62 = vld [vmem:[#allocation5 + $0x1e4] ss:$16 sps:$4 sm:$0xff]  }
  0x93   :  { %v3344_v63 = vld [vmem:[#allocation5 + $0x1ec] ss:$16 sps:$4 sm:$0xff]   ;;  %v3346_v0 = vld [vmem:[#allocation5 + $0x1e0] ss:$16 sps:$4 sm:$0xff]   ;;  %v3347_v1 = vld [vmem:[#allocation5 + $0x1e8] ss:$16 sps:$4 sm:$0xff]  }
  0x94   :  { %1366 = vmatpush1.bf16.msra.mxu0 %v3286_v22  ;;  %1530 = vmatpush1.bf16.msra.mxu1 %v3287_v23  ;;  %v139_v2 = vld [vmem:[#allocation2] sm:$0xff]  ;;  %v3350_v3 = vld [vmem:[#allocation5 + $0x204] ss:$16 sps:$4 sm:$0xff]   ;;  %v3348_v6 = vld [vmem:[#allocation5 + $0x200] ss:$16 sps:$4 sm:$0xff]   ;;  %vm3905_vm1 = vmmov 0  }
  0x95   :  { %1367 = vmatprep.subr.bf16.mxu0 %v3288_v24  ;;  %1531 = vmatprep.subr.bf16.mxu1 %v3290_v25  ;;  %v3353_v4 = vld [vmem:[#allocation5 + $0x20c] ss:$16 sps:$4 sm:$0xff]   ;;  %v146_v5 = vpack.c.bf16 %v139_v2, %v139_v2  ;;  %v3351_v7 = vld [vmem:[#allocation5 + $0x208] ss:$16 sps:$4 sm:$0xff]   ;;  %v3356_v8 = vld [vmem:[#allocation5 + $0x224] ss:$16 sps:$4 sm:$0xff]  }
  0x96   :  { %v3359_v9 = vld [vmem:[#allocation5 + $0x22c] ss:$16 sps:$4 sm:$0xff]   ;;  %v3354_v10 = vld [vmem:[#allocation5 + $0x220] ss:$16 sps:$4 sm:$0xff]   ;;  %v3357_v11 = vld [vmem:[#allocation5 + $0x228] ss:$16 sps:$4 sm:$0xff]  }
  0x97   :  { %v3362_v12 = vld [vmem:[#allocation5 + $0x244] ss:$16 sps:$4 sm:$0xff]   ;;  %v3365_v13 = vld [vmem:[#allocation5 + $0x24c] ss:$16 sps:$4 sm:$0xff]   ;;  %v3360_v14 = vld [vmem:[#allocation5 + $0x240] ss:$16 sps:$4 sm:$0xff]  }
  0x98   :  { %1368 = vmatpush1.bf16.msra.mxu0 %v3292_v26  ;;  %1532 = vmatpush1.bf16.msra.mxu1 %v3293_v27  ;;  %v3363_v15 = vld [vmem:[#allocation5 + $0x248] ss:$16 sps:$4 sm:$0xff]   ;;  %v3368_v16 = vld [vmem:[#allocation5 + $0x264] ss:$16 sps:$4 sm:$0xff]   ;;  %v3371_v17 = vld [vmem:[#allocation5 + $0x26c] ss:$16 sps:$4 sm:$0xff]  }
  0x99   :  { %1369 = vmatprep.subr.bf16.mxu0 %v3294_v28  ;;  %1533 = vmatprep.subr.bf16.mxu1 %v3296_v29  ;;  %v3366_v18 = vld [vmem:[#allocation5 + $0x260] ss:$16 sps:$4 sm:$0xff]   ;;  %v3369_v19 = vld [vmem:[#allocation5 + $0x268] ss:$16 sps:$4 sm:$0xff]   ;;  %v3374_v20 = vld [vmem:[#allocation5 + $0x284] ss:$16 sps:$4 sm:$0xff]  }
  0x9a   :  { %v3377_v21 = vld [vmem:[#allocation5 + $0x28c] ss:$16 sps:$4 sm:$0xff]   ;;  %v3372_v22 = vld [vmem:[#allocation5 + $0x280] ss:$16 sps:$4 sm:$0xff]   ;;  %v3375_v23 = vld [vmem:[#allocation5 + $0x288] ss:$16 sps:$4 sm:$0xff]  }
  0x9b   :  { %v3380_v24 = vld [vmem:[#allocation5 + $0x2a4] ss:$16 sps:$4 sm:$0xff]   ;;  %v3383_v25 = vld [vmem:[#allocation5 + $0x2ac] ss:$16 sps:$4 sm:$0xff]   ;;  %v3378_v26 = vld [vmem:[#allocation5 + $0x2a0] ss:$16 sps:$4 sm:$0xff]  }
  0x9c   :  { %1370 = vmatpush1.bf16.msra.mxu0 %v3298_v30  ;;  %1534 = vmatpush1.bf16.msra.mxu1 %v3299_v31  ;;  %v3381_v27 = vld [vmem:[#allocation5 + $0x2a8] ss:$16 sps:$4 sm:$0xff]   ;;  %v3386_v28 = vld [vmem:[#allocation5 + $0x2c4] ss:$16 sps:$4 sm:$0xff]   ;;  %v3389_v29 = vld [vmem:[#allocation5 + $0x2cc] ss:$16 sps:$4 sm:$0xff]  }
  0x9d   :  { %1371 = vmatprep.subr.bf16.mxu0 %v3300_v32  ;;  %1535 = vmatprep.subr.bf16.mxu1 %v3302_v33  ;;  %v142_v30 = vld [vmem:[#allocation2 + $0x18] sm:$0xff]  ;;  %v3387_v33 = vld [vmem:[#allocation5 + $0x2c8] ss:$16 sps:$4 sm:$0xff]  }
  0x9e   :  { %v3384_v31 = vld [vmem:[#allocation5 + $0x2c0] ss:$16 sps:$4 sm:$0xff]   ;;  %v149_v32 = vpack.c.bf16 %v142_v30, %v142_v30  ;;  %v3410_v46 = vld [vmem:[#allocation5 + $0x344] ss:$16 sps:$4 sm:$0xff]  }
  0x9f   :  { %v3408_v48 = vld [vmem:[#allocation5 + $0x340] ss:$16 sps:$4 sm:$0xff]   ;;  %v3440_v2 = vld [vmem:[#allocation5 + $0x3e4] ss:$16 sps:$4 sm:$0xff]  }
  0xa0   :  { %1372 = vmatpush1.bf16.msra.mxu0 %v3304_v34  ;;  %1536 = vmatpush1.bf16.msra.mxu1 %v3305_v35  ;;  %v3392_v34 = vld [vmem:[#allocation5 + $0x2e4] ss:$16 sps:$4 sm:$0xff]   ;;  %v3395_v35 = vld [vmem:[#allocation5 + $0x2ec] ss:$16 sps:$4 sm:$0xff]  }
  0xa1   :  { %1373 = vmatprep.subr.bf16.mxu0 %v3306_v36  ;;  %1537 = vmatprep.subr.bf16.mxu1 %v3308_v37  ;;  %v3390_v36 = vld [vmem:[#allocation5 + $0x2e0] ss:$16 sps:$4 sm:$0xff]   ;;  %v3393_v37 = vld [vmem:[#allocation5 + $0x2e8] ss:$16 sps:$4 sm:$0xff]   ;;  %v3476_v30 = vld [vmem:[#allocation5 + $0x4a4] ss:$16 sps:$4 sm:$0xff]  }
  0xa4   :  { %1374 = vmatpush1.bf16.msra.mxu0 %v3310_v38  ;;  %1538 = vmatpush1.bf16.msra.mxu1 %v3311_v39  ;;  %v3398_v38 = vld [vmem:[#allocation5 + $0x304] ss:$16 sps:$4 sm:$0xff]   ;;  %v3401_v39 = vld [vmem:[#allocation5 + $0x30c] ss:$16 sps:$4 sm:$0xff]  }
  0xa5   :  { %1375 = vmatprep.subr.bf16.mxu0 %v3312_v40  ;;  %1539 = vmatprep.subr.bf16.mxu1 %v3314_v41  ;;  %v3396_v40 = vld [vmem:[#allocation5 + $0x300] ss:$16 sps:$4 sm:$0xff]   ;;  %v3399_v41 = vld [vmem:[#allocation5 + $0x308] ss:$16 sps:$4 sm:$0xff]  }
  0xa8   :  { %1376 = vmatpush1.bf16.msra.mxu0 %v3316_v42  ;;  %1540 = vmatpush1.bf16.msra.mxu1 %v3317_v43  ;;  %v3404_v42 = vld [vmem:[#allocation5 + $0x324] ss:$16 sps:$4 sm:$0xff]   ;;  %v3407_v43 = vld [vmem:[#allocation5 + $0x32c] ss:$16 sps:$4 sm:$0xff]  }
  0xa9   :  { %1377 = vmatprep.subr.bf16.mxu0 %v3318_v44  ;;  %1541 = vmatprep.subr.bf16.mxu1 %v3320_v45  ;;  %v3402_v44 = vld [vmem:[#allocation5 + $0x320] ss:$16 sps:$4 sm:$0xff]   ;;  %v3405_v45 = vld [vmem:[#allocation5 + $0x328] ss:$16 sps:$4 sm:$0xff]  }
  0xac   :  { %1378 = vmatpush1.bf16.msra.mxu0 %v3322_v47  ;;  %1542 = vmatpush1.bf16.msra.mxu1 %v3323_v49  ;;  %v3413_v47 = vld [vmem:[#allocation5 + $0x34c] ss:$16 sps:$4 sm:$0xff]   ;;  %v3411_v49 = vld [vmem:[#allocation5 + $0x348] ss:$16 sps:$4 sm:$0xff]  }
  0xad   :  { %1379 = vmatprep.subr.bf16.mxu0 %v3324_v50  ;;  %1543 = vmatprep.subr.bf16.mxu1 %v3326_v51  ;;  %v3416_v50 = vld [vmem:[#allocation5 + $0x364] ss:$16 sps:$4 sm:$0xff]   ;;  %v3419_v51 = vld [vmem:[#allocation5 + $0x36c] ss:$16 sps:$4 sm:$0xff]  }
  0xb0   :  { %1380 = vmatpush1.bf16.msra.mxu0 %v3328_v52  ;;  %1544 = vmatpush1.bf16.msra.mxu1 %v3329_v53  ;;  %v3414_v52 = vld [vmem:[#allocation5 + $0x360] ss:$16 sps:$4 sm:$0xff]   ;;  %v3417_v53 = vld [vmem:[#allocation5 + $0x368] ss:$16 sps:$4 sm:$0xff]  }
  0xb1   :  { %1381 = vmatprep.subr.bf16.mxu0 %v3330_v54  ;;  %1545 = vmatprep.subr.bf16.mxu1 %v3332_v55  ;;  %v3422_v54 = vld [vmem:[#allocation5 + $0x384] ss:$16 sps:$4 sm:$0xff]   ;;  %v3425_v55 = vld [vmem:[#allocation5 + $0x38c] ss:$16 sps:$4 sm:$0xff]  }
  0xb4   :  { %1382 = vmatpush1.bf16.msra.mxu0 %v3334_v56  ;;  %1546 = vmatpush1.bf16.msra.mxu1 %v3335_v57  ;;  %v3420_v56 = vld [vmem:[#allocation5 + $0x380] ss:$16 sps:$4 sm:$0xff]   ;;  %v3423_v57 = vld [vmem:[#allocation5 + $0x388] ss:$16 sps:$4 sm:$0xff]  }
  0xb5   :  { %1383 = vmatprep.subr.bf16.mxu0 %v3336_v58  ;;  %1547 = vmatprep.subr.bf16.mxu1 %v3338_v59  ;;  %v3428_v58 = vld [vmem:[#allocation5 + $0x3a4] ss:$16 sps:$4 sm:$0xff]   ;;  %v3431_v59 = vld [vmem:[#allocation5 + $0x3ac] ss:$16 sps:$4 sm:$0xff]  }
  0xb8   :  { %1384 = vmatpush1.bf16.msra.mxu0 %v3340_v60  ;;  %1548 = vmatpush1.bf16.msra.mxu1 %v3341_v61  ;;  %v3426_v60 = vld [vmem:[#allocation5 + $0x3a0] ss:$16 sps:$4 sm:$0xff]   ;;  %v3429_v61 = vld [vmem:[#allocation5 + $0x3a8] ss:$16 sps:$4 sm:$0xff]  }
  0xb9   :  { %1385 = vmatprep.subr.bf16.mxu0 %v3342_v62  ;;  %1549 = vmatprep.subr.bf16.mxu1 %v3344_v63  ;;  %v3434_v62 = vld [vmem:[#allocation5 + $0x3c4] ss:$16 sps:$4 sm:$0xff]   ;;  %v3437_v63 = vld [vmem:[#allocation5 + $0x3cc] ss:$16 sps:$4 sm:$0xff]  }
  0xbc   :  { %1386 = vmatpush1.bf16.msra.mxu0 %v3346_v0  ;;  %1550 = vmatpush1.bf16.msra.mxu1 %v3347_v1  ;;  %v3432_v0 = vld [vmem:[#allocation5 + $0x3c0] ss:$16 sps:$4 sm:$0xff]   ;;  %v3435_v1 = vld [vmem:[#allocation5 + $0x3c8] ss:$16 sps:$4 sm:$0xff]  }
  0xbd   :  { %1396 = vmatprep.subr.bf16.mxu0 %v3350_v3  ;;  %1560 = vmatprep.subr.bf16.mxu1 %v3353_v4  ;;  %v3443_v3 = vld [vmem:[#allocation5 + $0x3ec] ss:$16 sps:$4 sm:$0xff]   ;;  %v3438_v4 = vld [vmem:[#allocation5 + $0x3e0] ss:$16 sps:$4 sm:$0xff]  }
  0xbf   :  { %1388 = vmatmul.mubr.bf16.vlgmr.msra.gmra.mrb[0].mxu0 %v146_v5  ;;  %1552 = vmatmul.mubr.bf16.vlgmr.msra.gmra.mrb[0].mxu1 %v146_v5  ;;  %v3441_v5 = vld [vmem:[#allocation5 + $0x3e8] ss:$16 sps:$4 sm:$0xff]  }
  0xc0   :  { %1397 = vmatpush1.bf16.msra.mxu0 %v3348_v6  ;;  %1561 = vmatpush1.bf16.msra.mxu1 %v3351_v7  ;;  %v3446_v6 = vld [vmem:[#allocation5 + $0x404] ss:$16 sps:$4 sm:$0xff]   ;;  %v141_v7 = vld [vmem:[#allocation2 + $0x10] sm:$0xff] }
  0xc1   :  { %1398 = vmatprep.subr.bf16.mxu0 %v3356_v8  ;;  %1562 = vmatprep.subr.bf16.mxu1 %v3359_v9  ;;  %v3449_v8 = vld [vmem:[#allocation5 + $0x40c] ss:$16 sps:$4 sm:$0xff]   ;;  %v3444_v9 = vld [vmem:[#allocation5 + $0x400] ss:$16 sps:$4 sm:$0xff]  }
  0xc2   :  { %1428 = vmatprep.mubr.bf16.mxu0 %v149_v32  ;;  %1592 = vmatprep.mubr.bf16.mxu1 %v149_v32  ;;  %v3474_v32 = vld [vmem:[#allocation5 + $0x4a0] ss:$16 sps:$4 sm:$0xff]  }
  0xc4   :  { %1399 = vmatpush1.bf16.msra.mxu0 %v3354_v10  ;;  %1563 = vmatpush1.bf16.msra.mxu1 %v3357_v11  ;;  %v148_v10 = vpack.c.bf16 %v141_v7, %v141_v7  ;;  %v3447_v11 = vld [vmem:[#allocation5 + $0x408] ss:$16 sps:$4 sm:$0xff]   ;;  %v3539_v7 = vld [vmem:[#allocation5 + $0x5ec] ss:$16 sps:$4 sm:$0xff]  }
  0xc5   :  { %1400 = vmatprep.subr.bf16.mxu0 %v3362_v12  ;;  %1564 = vmatprep.subr.bf16.mxu1 %v3365_v13  ;;  %v3452_v12 = vld [vmem:[#allocation5 + $0x424] ss:$16 sps:$4 sm:$0xff]   ;;  %v3455_v13 = vld [vmem:[#allocation5 + $0x42c] ss:$16 sps:$4 sm:$0xff]  }
  0xc8   :  { %1401 = vmatpush1.bf16.msra.mxu0 %v3360_v14  ;;  %1565 = vmatpush1.bf16.msra.mxu1 %v3363_v15  ;;  %v144_v14 = vld [vmem:[#allocation2 + $0x28] sm:$0xff] }
  0xc9   :  { %1402 = vmatprep.subr.bf16.mxu0 %v3368_v16  ;;  %1566 = vmatprep.subr.bf16.mxu1 %v3371_v17  ;;  %v151_v15 = vpack.c.bf16 %v144_v14, %v144_v14  ;;  %v3450_v16 = vld [vmem:[#allocation5 + $0x420] ss:$16 sps:$4 sm:$0xff]   ;;  %v3453_v17 = vld [vmem:[#allocation5 + $0x428] ss:$16 sps:$4 sm:$0xff]  }
  0xca   :  { %v3540_v14 = vld [vmem:[#allocation5 + $0x600] ss:$16 sps:$4 sm:$0xff]  }
  0xcc   :  { %1403 = vmatpush1.bf16.msra.mxu0 %v3366_v18  ;;  %1567 = vmatpush1.bf16.msra.mxu1 %v3369_v19  ;;  %v3458_v18 = vld [vmem:[#allocation5 + $0x444] ss:$16 sps:$4 sm:$0xff]   ;;  %v3461_v19 = vld [vmem:[#allocation5 + $0x44c] ss:$16 sps:$4 sm:$0xff]  }
  0xcd   :  { %1404 = vmatprep.subr.bf16.mxu0 %v3374_v20  ;;  %1568 = vmatprep.subr.bf16.mxu1 %v3377_v21  ;;  %v3456_v20 = vld [vmem:[#allocation5 + $0x440] ss:$16 sps:$4 sm:$0xff]   ;;  %v3459_v21 = vld [vmem:[#allocation5 + $0x448] ss:$16 sps:$4 sm:$0xff]  }
  0xd0   :  { %1405 = vmatpush1.bf16.msra.mxu0 %v3372_v22  ;;  %1569 = vmatpush1.bf16.msra.mxu1 %v3375_v23  ;;  %v3464_v22 = vld [vmem:[#allocation5 + $0x464] ss:$16 sps:$4 sm:$0xff]   ;;  %v3467_v23 = vld [vmem:[#allocation5 + $0x46c] ss:$16 sps:$4 sm:$0xff]  }
  0xd1   :  { %1406 = vmatprep.subr.bf16.mxu0 %v3380_v24  ;;  %1570 = vmatprep.subr.bf16.mxu1 %v3383_v25  ;;  %v3462_v24 = vld [vmem:[#allocation5 + $0x460] ss:$16 sps:$4 sm:$0xff]   ;;  %v3465_v25 = vld [vmem:[#allocation5 + $0x468] ss:$16 sps:$4 sm:$0xff]  }
  0xd4   :  { %1407 = vmatpush1.bf16.msra.mxu0 %v3378_v26  ;;  %1571 = vmatpush1.bf16.msra.mxu1 %v3381_v27  ;;  %v3470_v26 = vld [vmem:[#allocation5 + $0x484] ss:$16 sps:$4 sm:$0xff]   ;;  %v3473_v27 = vld [vmem:[#allocation5 + $0x48c] ss:$16 sps:$4 sm:$0xff]  }
  0xd5   :  { %1408 = vmatprep.subr.bf16.mxu0 %v3386_v28  ;;  %1572 = vmatprep.subr.bf16.mxu1 %v3389_v29  ;;  %v3468_v28 = vld [vmem:[#allocation5 + $0x480] ss:$16 sps:$4 sm:$0xff]   ;;  %v3471_v29 = vld [vmem:[#allocation5 + $0x488] ss:$16 sps:$4 sm:$0xff]  }
  0xd8   :  { %1409 = vmatpush1.bf16.msra.mxu0 %v3384_v31  ;;  %1573 = vmatpush1.bf16.msra.mxu1 %v3387_v33  ;;  %v3479_v31 = vld [vmem:[#allocation5 + $0x4ac] ss:$16 sps:$4 sm:$0xff]   ;;  %v3477_v33 = vld [vmem:[#allocation5 + $0x4a8] ss:$16 sps:$4 sm:$0xff]  }
  0xd9   :  { %1410 = vmatprep.subr.bf16.mxu0 %v3392_v34  ;;  %1574 = vmatprep.subr.bf16.mxu1 %v3395_v35  ;;  %v3482_v34 = vld [vmem:[#allocation5 + $0x4c4] ss:$16 sps:$4 sm:$0xff]   ;;  %v3485_v35 = vld [vmem:[#allocation5 + $0x4cc] ss:$16 sps:$4 sm:$0xff]  }
  0xdc   :  { %1411 = vmatpush1.bf16.msra.mxu0 %v3390_v36  ;;  %1575 = vmatpush1.bf16.msra.mxu1 %v3393_v37  ;;  %v3480_v36 = vld [vmem:[#allocation5 + $0x4c0] ss:$16 sps:$4 sm:$0xff]   ;;  %v3483_v37 = vld [vmem:[#allocation5 + $0x4c8] ss:$16 sps:$4 sm:$0xff]  }
  0xdd   :  { %1412 = vmatprep.subr.bf16.mxu0 %v3398_v38  ;;  %1576 = vmatprep.subr.bf16.mxu1 %v3401_v39  ;;  %v3488_v38 = vld [vmem:[#allocation5 + $0x4e4] ss:$16 sps:$4 sm:$0xff]   ;;  %v3491_v39 = vld [vmem:[#allocation5 + $0x4ec] ss:$16 sps:$4 sm:$0xff]  }
  0xe0   :  { %1413 = vmatpush1.bf16.msra.mxu0 %v3396_v40  ;;  %1577 = vmatpush1.bf16.msra.mxu1 %v3399_v41  ;;  %v3486_v40 = vld [vmem:[#allocation5 + $0x4e0] ss:$16 sps:$4 sm:$0xff]   ;;  %v3489_v41 = vld [vmem:[#allocation5 + $0x4e8] ss:$16 sps:$4 sm:$0xff]  }
  0xe1   :  { %1414 = vmatprep.subr.bf16.mxu0 %v3404_v42  ;;  %1578 = vmatprep.subr.bf16.mxu1 %v3407_v43  ;;  %v3494_v42 = vld [vmem:[#allocation5 + $0x504] ss:$16 sps:$4 sm:$0xff]   ;;  %v3497_v43 = vld [vmem:[#allocation5 + $0x50c] ss:$16 sps:$4 sm:$0xff]  }
  0xe4   :  { %1415 = vmatpush1.bf16.msra.mxu0 %v3402_v44  ;;  %1579 = vmatpush1.bf16.msra.mxu1 %v3405_v45  ;;  %v3492_v44 = vld [vmem:[#allocation5 + $0x500] ss:$16 sps:$4 sm:$0xff]   ;;  %v3495_v45 = vld [vmem:[#allocation5 + $0x508] ss:$16 sps:$4 sm:$0xff]  }
  0xe5   :  { %1416 = vmatprep.subr.bf16.mxu0 %v3410_v46  ;;  %1580 = vmatprep.subr.bf16.mxu1 %v3413_v47  ;;  %v3500_v46 = vld [vmem:[#allocation5 + $0x524] ss:$16 sps:$4 sm:$0xff]   ;;  %v3503_v47 = vld [vmem:[#allocation5 + $0x52c] ss:$16 sps:$4 sm:$0xff]  }
  0xe8   :  { %1417 = vmatpush1.bf16.msra.mxu0 %v3408_v48  ;;  %1581 = vmatpush1.bf16.msra.mxu1 %v3411_v49  ;;  %v3498_v48 = vld [vmem:[#allocation5 + $0x520] ss:$16 sps:$4 sm:$0xff]   ;;  %v3501_v49 = vld [vmem:[#allocation5 + $0x528] ss:$16 sps:$4 sm:$0xff]  }
  0xe9   :  { %1418 = vmatprep.subr.bf16.mxu0 %v3416_v50  ;;  %1582 = vmatprep.subr.bf16.mxu1 %v3419_v51  ;;  %v3506_v50 = vld [vmem:[#allocation5 + $0x544] ss:$16 sps:$4 sm:$0xff]   ;;  %v3509_v51 = vld [vmem:[#allocation5 + $0x54c] ss:$16 sps:$4 sm:$0xff]  }
  0xec   :  { %1419 = vmatpush1.bf16.msra.mxu0 %v3414_v52  ;;  %1583 = vmatpush1.bf16.msra.mxu1 %v3417_v53  ;;  %v3504_v52 = vld [vmem:[#allocation5 + $0x540] ss:$16 sps:$4 sm:$0xff]   ;;  %v3507_v53 = vld [vmem:[#allocation5 + $0x548] ss:$16 sps:$4 sm:$0xff]  }
  0xed   :  { %1420 = vmatprep.subr.bf16.mxu0 %v3422_v54  ;;  %1584 = vmatprep.subr.bf16.mxu1 %v3425_v55  ;;  %v3512_v54 = vld [vmem:[#allocation5 + $0x564] ss:$16 sps:$4 sm:$0xff]   ;;  %v3515_v55 = vld [vmem:[#allocation5 + $0x56c] ss:$16 sps:$4 sm:$0xff]  }
  0xf0   :  { %1421 = vmatpush1.bf16.msra.mxu0 %v3420_v56  ;;  %1585 = vmatpush1.bf16.msra.mxu1 %v3423_v57  ;;  %v3510_v56 = vld [vmem:[#allocation5 + $0x560] ss:$16 sps:$4 sm:$0xff]   ;;  %v3513_v57 = vld [vmem:[#allocation5 + $0x568] ss:$16 sps:$4 sm:$0xff]  }
  0xf1   :  { %1422 = vmatprep.subr.bf16.mxu0 %v3428_v58  ;;  %1586 = vmatprep.subr.bf16.mxu1 %v3431_v59  ;;  %v3518_v58 = vld [vmem:[#allocation5 + $0x584] ss:$16 sps:$4 sm:$0xff]   ;;  %v3521_v59 = vld [vmem:[#allocation5 + $0x58c] ss:$16 sps:$4 sm:$0xff]  }
  0xf4   :  { %1423 = vmatpush1.bf16.msra.mxu0 %v3426_v60  ;;  %1587 = vmatpush1.bf16.msra.mxu1 %v3429_v61  ;;  %v3516_v60 = vld [vmem:[#allocation5 + $0x580] ss:$16 sps:$4 sm:$0xff]   ;;  %v3519_v61 = vld [vmem:[#allocation5 + $0x588] ss:$16 sps:$4 sm:$0xff]  }
  0xf5   :  { %1424 = vmatprep.subr.bf16.mxu0 %v3434_v62  ;;  %1588 = vmatprep.subr.bf16.mxu1 %v3437_v63  ;;  %v3524_v62 = vld [vmem:[#allocation5 + $0x5a4] ss:$16 sps:$4 sm:$0xff]   ;;  %v3527_v63 = vld [vmem:[#allocation5 + $0x5ac] ss:$16 sps:$4 sm:$0xff]  }
  0xf8   :  { %1425 = vmatpush1.bf16.msra.mxu0 %v3432_v0  ;;  %1589 = vmatpush1.bf16.msra.mxu1 %v3435_v1  ;;  %v3522_v0 = vld [vmem:[#allocation5 + $0x5a0] ss:$16 sps:$4 sm:$0xff]   ;;  %v3525_v1 = vld [vmem:[#allocation5 + $0x5a8] ss:$16 sps:$4 sm:$0xff]  }
  0xf9   :  { %1426 = vmatprep.subr.bf16.mxu0 %v3440_v2  ;;  %1590 = vmatprep.subr.bf16.mxu1 %v3443_v3  ;;  %v3530_v2 = vld [vmem:[#allocation5 + $0x5c4] ss:$16 sps:$4 sm:$0xff]   ;;  %v3533_v3 = vld [vmem:[#allocation5 + $0x5cc] ss:$16 sps:$4 sm:$0xff]  }
  0xfc   :  { %1427 = vmatpush1.bf16.msra.mxu0 %v3438_v4  ;;  %1591 = vmatpush1.bf16.msra.mxu1 %v3441_v5  ;;  %v3528_v4 = vld [vmem:[#allocation5 + $0x5c0] ss:$16 sps:$4 sm:$0xff]   ;;  %v3531_v5 = vld [vmem:[#allocation5 + $0x5c8] ss:$16 sps:$4 sm:$0xff]  }
  0xfd   :  { %1437 = vmatprep.subr.bf16.mxu0 %v3446_v6  ;;  %1601 = vmatprep.subr.bf16.mxu1 %v3449_v8  ;;  %v3536_v6 = vld [vmem:[#allocation5 + $0x5e4] ss:$16 sps:$4 sm:$0xff]   ;;  %v3534_v8 = vld [vmem:[#allocation5 + $0x5e0] ss:$16 sps:$4 sm:$0xff]  }
  0xff   :  { %1429 = vmatmul.mubr.bf16.vlgmr.msra.gmra.mrb[0].mxu0 %v148_v10  ;;  %1593 = vmatmul.mubr.bf16.vlgmr.msra.gmra.mrb[0].mxu1 %v148_v10  ;;  %v143_v10 = vld [vmem:[#allocation2 + $0x20] sm:$0xff] }
 0x100   :  { %1438 = vmatpush1.bf16.msra.mxu0 %v3444_v9  ;;  %1602 = vmatpush1.bf16.msra.mxu1 %v3447_v11  ;;  %v3537_v9 = vld [vmem:[#allocation5 + $0x5e8] ss:$16 sps:$4 sm:$0xff]   ;;  %v3542_v11 = vld [vmem:[#allocation5 + $0x604] ss:$16 sps:$4 sm:$0xff]  }
 0x101   :  { %1439 = vmatprep.subr.bf16.mxu0 %v3452_v12  ;;  %1603 = vmatprep.subr.bf16.mxu1 %v3455_v13  ;;  %v3545_v12 = vld [vmem:[#allocation5 + $0x60c] ss:$16 sps:$4 sm:$0xff]   ;;  %v150_v13 = vpack.c.bf16 %v143_v10, %v143_v10 }
 0x102   :  { %1469 = vmatprep.mubr.bf16.mxu0 %v151_v15  ;;  %1633 = vmatprep.mubr.bf16.mxu1 %v151_v15  ;;  %v3543_v15 = vld [vmem:[#allocation5 + $0x608] ss:$16 sps:$4 sm:$0xff]  }
 0x104   :  { %1440 = vmatpush1.bf16.msra.mxu0 %v3450_v16  ;;  %1604 = vmatpush1.bf16.msra.mxu1 %v3453_v17  ;;  %v3548_v16 = vld [vmem:[#allocation7 + $0x4] ss:$8 sps:$4 sm:$0xff]   ;;  %v3903_v17 = vmov 0  }
 0x105   :  { %1441 = vmatprep.subr.bf16.mxu0 %v3458_v18  ;;  %1605 = vmatprep.subr.bf16.mxu1 %v3461_v19  ;;  %v145_v18 = vld [vmem:[#allocation2 + $0x30] sm:$0xff] }
 0x106   :  { %v152_v19 = vpack.c.bf16 %v145_v18, %v145_v18 }
 0x108   :  { %1442 = vmatpush1.bf16.msra.mxu0 %v3456_v20  ;;  %1606 = vmatpush1.bf16.msra.mxu1 %v3459_v21  ;;  %v3546_v20 = vld [vmem:[#allocation7] ss:$8 sps:$4 sm:$0xff]   ;;  %v3551_v21 = vld [vmem:[#allocation7 + $0x14] ss:$8 sps:$4 sm:$0xff]  }
 0x109   :  { %1443 = vmatprep.subr.bf16.mxu0 %v3464_v22  ;;  %1607 = vmatprep.subr.bf16.mxu1 %v3467_v23  ;;  %v3549_v22 = vld [vmem:[#allocation7 + $0x10] ss:$8 sps:$4 sm:$0xff]   ;;  %v3554_v23 = vld [vmem:[#allocation7 + $0x24] ss:$8 sps:$4 sm:$0xff]  }
 0x10c   :  { %1444 = vmatpush1.bf16.msra.mxu0 %v3462_v24  ;;  %1608 = vmatpush1.bf16.msra.mxu1 %v3465_v25  ;;  %v3552_v24 = vld [vmem:[#allocation7 + $0x20] ss:$8 sps:$4 sm:$0xff]   ;;  %v3557_v25 = vld [vmem:[#allocation7 + $0x34] ss:$8 sps:$4 sm:$0xff]  }
 0x10d   :  { %1445 = vmatprep.subr.bf16.mxu0 %v3470_v26  ;;  %1609 = vmatprep.subr.bf16.mxu1 %v3473_v27  ;;  %v3555_v26 = vld [vmem:[#allocation7 + $0x30] ss:$8 sps:$4 sm:$0xff]   ;;  %v3560_v27 = vld [vmem:[#allocation7 + $0x44] ss:$8 sps:$4 sm:$0xff]  }
 0x110   :  { %1446 = vmatpush1.bf16.msra.mxu0 %v3468_v28  ;;  %1610 = vmatpush1.bf16.msra.mxu1 %v3471_v29  ;;  %v3558_v28 = vld [vmem:[#allocation7 + $0x40] ss:$8 sps:$4 sm:$0xff]   ;;  %v3563_v29 = vld [vmem:[#allocation7 + $0x54] ss:$8 sps:$4 sm:$0xff]  }
 0x111   :  { %1447 = vmatprep.subr.bf16.mxu0 %v3476_v30  ;;  %1611 = vmatprep.subr.bf16.mxu1 %v3479_v31  ;;  %v3561_v30 = vld [vmem:[#allocation7 + $0x50] ss:$8 sps:$4 sm:$0xff]   ;;  %v3566_v31 = vld [vmem:[#allocation7 + $0x64] ss:$8 sps:$4 sm:$0xff]  }
 0x114   :  { %1448 = vmatpush1.bf16.msra.mxu0 %v3474_v32  ;;  %1612 = vmatpush1.bf16.msra.mxu1 %v3477_v33  ;;  %v3564_v32 = vld [vmem:[#allocation7 + $0x60] ss:$8 sps:$4 sm:$0xff]   ;;  %v3569_v33 = vld [vmem:[#allocation7 + $0x74] ss:$8 sps:$4 sm:$0xff]  }
 0x115   :  { %1449 = vmatprep.subr.bf16.mxu0 %v3482_v34  ;;  %1613 = vmatprep.subr.bf16.mxu1 %v3485_v35  ;;  %v3567_v34 = vld [vmem:[#allocation7 + $0x70] ss:$8 sps:$4 sm:$0xff]   ;;  %v3572_v35 = vld [vmem:[#allocation7 + $0x84] ss:$8 sps:$4 sm:$0xff]  }
 0x118   :  { %1450 = vmatpush1.bf16.msra.mxu0 %v3480_v36  ;;  %1614 = vmatpush1.bf16.msra.mxu1 %v3483_v37  ;;  %v3570_v36 = vld [vmem:[#allocation7 + $0x80] ss:$8 sps:$4 sm:$0xff]   ;;  %v3575_v37 = vld [vmem:[#allocation7 + $0x94] ss:$8 sps:$4 sm:$0xff]  }
 0x119   :  { %1451 = vmatprep.subr.bf16.mxu0 %v3488_v38  ;;  %1615 = vmatprep.subr.bf16.mxu1 %v3491_v39  ;;  %v3573_v38 = vld [vmem:[#allocation7 + $0x90] ss:$8 sps:$4 sm:$0xff]   ;;  %v3578_v39 = vld [vmem:[#allocation7 + $0xa4] ss:$8 sps:$4 sm:$0xff]  }
 0x11c   :  { %1452 = vmatpush1.bf16.msra.mxu0 %v3486_v40  ;;  %1616 = vmatpush1.bf16.msra.mxu1 %v3489_v41  ;;  %v3576_v40 = vld [vmem:[#allocation7 + $0xa0] ss:$8 sps:$4 sm:$0xff]   ;;  %v3581_v41 = vld [vmem:[#allocation7 + $0xb4] ss:$8 sps:$4 sm:$0xff]  }
 0x11d   :  { %1453 = vmatprep.subr.bf16.mxu0 %v3494_v42  ;;  %1617 = vmatprep.subr.bf16.mxu1 %v3497_v43  ;;  %v3579_v42 = vld [vmem:[#allocation7 + $0xb0] ss:$8 sps:$4 sm:$0xff]   ;;  %v3582_v43 = vld [vmem:[#allocation7 + $0xc0] ss:$8 sps:$4 sm:$0xff]  }
 0x120   :  { %1454 = vmatpush1.bf16.msra.mxu0 %v3492_v44  ;;  %1618 = vmatpush1.bf16.msra.mxu1 %v3495_v45  ;;  %v3584_v44 = vld [vmem:[#allocation7 + $0xc4] ss:$8 sps:$4 sm:$0xff]   ;;  %v3587_v45 = vld [vmem:[#allocation7 + $0xd4] ss:$8 sps:$4 sm:$0xff]  }
 0x121   :  { %1455 = vmatprep.subr.bf16.mxu0 %v3500_v46  ;;  %1619 = vmatprep.subr.bf16.mxu1 %v3503_v47  ;;  %v3585_v46 = vld [vmem:[#allocation7 + $0xd0] ss:$8 sps:$4 sm:$0xff]   ;;  %v3590_v47 = vld [vmem:[#allocation7 + $0xe4] ss:$8 sps:$4 sm:$0xff]  }
 0x124   :  { %1456 = vmatpush1.bf16.msra.mxu0 %v3498_v48  ;;  %1620 = vmatpush1.bf16.msra.mxu1 %v3501_v49  ;;  %v3588_v48 = vld [vmem:[#allocation7 + $0xe0] ss:$8 sps:$4 sm:$0xff]   ;;  %v3593_v49 = vld [vmem:[#allocation7 + $0xf4] ss:$8 sps:$4 sm:$0xff]  }
 0x125   :  { %1457 = vmatprep.subr.bf16.mxu0 %v3506_v50  ;;  %1621 = vmatprep.subr.bf16.mxu1 %v3509_v51  ;;  %v3591_v50 = vld [vmem:[#allocation7 + $0xf0] ss:$8 sps:$4 sm:$0xff]   ;;  %v3596_v51 = vld [vmem:[#allocation7 + $0x104] ss:$8 sps:$4 sm:$0xff]  }
 0x128   :  { %1458 = vmatpush1.bf16.msra.mxu0 %v3504_v52  ;;  %1622 = vmatpush1.bf16.msra.mxu1 %v3507_v53  ;;  %v351_v52 = vlaneseq }
 0x129   :  { %1459 = vmatprep.subr.bf16.mxu0 %v3512_v54  ;;  %1623 = vmatprep.subr.bf16.mxu1 %v3515_v55  ;;  %v4079_v55 = vld [vmem:[%s4155_s2] sm:$0xf] }
 0x12a   :  { %v4073_v53 = vshrl.u32 %v351_v52, 7  ;;  %v3609_v52 = vld [vmem:[#allocation7 + $0x150] ss:$8 sps:$4 sm:$0xff]  }
 0x12c   :  { %1460 = vmatpush1.bf16.msra.mxu0 %v3510_v56  ;;  %1624 = vmatpush1.bf16.msra.mxu1 %v3513_v57  ;;  %v353_v54 = vsub.s32 0, %v4073_v53  ;;  %v357_v56 = vsub.s32 1, %v4073_v53  ;;  %v365_v57 = vsub.s32 3, %v4073_v53 }
 0x12d   :  { %1461 = vmatprep.subr.bf16.mxu0 %v3518_v58  ;;  %1625 = vmatprep.subr.bf16.mxu1 %v3521_v59 }
 0x12e   :  { %v354_v58 = vrot.slane %v4079_v55, %v353_v54  ;;  %v358_v59 = vrot.slane %v4079_v55, %v357_v56 }
 0x130   :  { %1462 = vmatpush1.bf16.msra.mxu0 %v3516_v60  ;;  %1626 = vmatpush1.bf16.msra.mxu1 %v3519_v61  ;;  %v366_v60 = vrot.slane %v4079_v55, %v365_v57  ;;  %v3614_v57 = vld [vmem:[#allocation7 + $0x164] ss:$8 sps:$4 sm:$0xff]  }
 0x131   :  { %1463 = vmatprep.subr.bf16.mxu0 %v3524_v62  ;;  %1627 = vmatprep.subr.bf16.mxu1 %v3527_v63 }
 0x134   :  { %1464 = vmatpush1.bf16.msra.mxu0 %v3522_v0  ;;  %1628 = vmatpush1.bf16.msra.mxu1 %v3525_v1 }
 0x135   :  { %1465 = vmatprep.subr.bf16.mxu0 %v3530_v2  ;;  %1629 = vmatprep.subr.bf16.mxu1 %v3533_v3 }
 0x138   :  { %1466 = vmatpush1.bf16.msra.mxu0 %v3528_v4  ;;  %1630 = vmatpush1.bf16.msra.mxu1 %v3531_v5 }
 0x139   :  { %1467 = vmatprep.subr.bf16.mxu0 %v3536_v6  ;;  %1631 = vmatprep.subr.bf16.mxu1 %v3539_v7 }
 0x13c   :  { %1468 = vmatpush1.bf16.msra.mxu0 %v3534_v8  ;;  %1632 = vmatpush1.bf16.msra.mxu1 %v3537_v9 }
 0x13d   :  { %1478 = vmatprep.subr.bf16.mxu0 %v3542_v11  ;;  %1642 = vmatprep.subr.bf16.mxu1 %v3545_v12 }
 0x13f   :  { %1470 = vmatmul.mubr.bf16.vlgmr.msra.gmra.mrb[0].mxu0 %v150_v13  ;;  %1634 = vmatmul.mubr.bf16.vlgmr.msra.gmra.mrb[0].mxu1 %v150_v13 }
 0x140   :  { %1479 = vmatpush1.bf16.msra.mxu0 %v3540_v14  ;;  %1643 = vmatpush1.bf16.msra.mxu1 %v3543_v15 }
 0x141   :  { %1510 = vmatprep.mubr.bf16.mxu0 %v3903_v17  ;;  %1674 = vmatprep.mubr.bf16.mxu1 %v3903_v17 }
 0x142   :  { %2119 = vmatprep.subr.bf16.mxu0 %v3548_v16 }
 0x14b   :  { %2981 = vmatmul.mubr.msk.bf16.vlgmr.msra.gmra.mrb[0].mxu0 %vm1351_vm0, %v152_v19  ;;  %2982 = vmatmul.mubr.msk.bf16.vlgmr.msra.gmra.mrb[0].mxu1 %vm1351_vm0, %v152_v19 }
 0x14c   :  { %2120 = vmatpush1.bf16.msra.mxu0 %v3546_v20 }
 0x14d   :  { %2121 = vmatprep.subr.bf16.mxu0 %v3551_v21 }
 0x150   :  { %2122 = vmatpush1.bf16.msra.mxu0 %v3549_v22 }
 0x151   :  { %2123 = vmatprep.subr.bf16.mxu0 %v3554_v23 }
 0x154   :  { %2124 = vmatpush1.bf16.msra.mxu0 %v3552_v24 }
 0x155   :  { %2125 = vmatprep.subr.bf16.mxu0 %v3557_v25 }
 0x158   :  { %2126 = vmatpush1.bf16.msra.mxu0 %v3555_v26 }
 0x159   :  { %2127 = vmatprep.subr.bf16.mxu0 %v3560_v27 }
 0x15c   :  { %2128 = vmatpush1.bf16.msra.mxu0 %v3558_v28 }
 0x15d   :  { %2129 = vmatprep.subr.bf16.mxu0 %v3563_v29 }
 0x160   :  { %2130 = vmatpush1.bf16.msra.mxu0 %v3561_v30 }
 0x161   :  { %2131 = vmatprep.subr.bf16.mxu0 %v3566_v31 }
 0x164   :  { %2132 = vmatpush1.bf16.msra.mxu0 %v3564_v32 }
 0x165   :  { %2133 = vmatprep.subr.bf16.mxu0 %v3569_v33 }
 0x168   :  { %2134 = vmatpush1.bf16.msra.mxu0 %v3567_v34 }
 0x169   :  { %2135 = vmatprep.subr.bf16.mxu0 %v3572_v35 }
 0x16c   :  { %2136 = vmatpush1.bf16.msra.mxu0 %v3570_v36  ;;  %v3594_v36 = vld [vmem:[#allocation7 + $0x100] ss:$8 sps:$4 sm:$0xff]  }
 0x16d   :  { %2137 = vmatprep.subr.bf16.mxu0 %v3575_v37 }
 0x170   :  { %2138 = vmatpush1.bf16.msra.mxu0 %v3573_v38  ;;  %v3599_v38 = vld [vmem:[#allocation7 + $0x114] ss:$8 sps:$4 sm:$0xff]  }
 0x171   :  { %2139 = vmatprep.subr.bf16.mxu0 %v3578_v39 }
 0x174   :  { %2140 = vmatpush1.bf16.msra.mxu0 %v3576_v40  ;;  %v3597_v40 = vld [vmem:[#allocation7 + $0x110] ss:$8 sps:$4 sm:$0xff]  }
 0x175   :  { %2141 = vmatprep.subr.bf16.mxu0 %v3581_v41  ;;  %v3602_v41 = vld [vmem:[#allocation7 + $0x124] ss:$8 sps:$4 sm:$0xff]  }
 0x178   :  { %2142 = vmatpush1.bf16.msra.mxu0 %v3579_v42  ;;  %v361_v42 = vsub.s32 2, %v4073_v53 }
 0x179   :  { %2143 = vmatprep.subr.bf16.mxu0 %v3584_v44  ;;  %v3605_v44 = vld [vmem:[#allocation7 + $0x134] ss:$8 sps:$4 sm:$0xff]  }
 0x17c   :  { %2144 = vmatpush1.bf16.msra.mxu0 %v3582_v43  ;;  %v3600_v43 = vld [vmem:[#allocation7 + $0x120] ss:$8 sps:$4 sm:$0xff]  }
 0x17d   :  { %2145 = vmatprep.subr.bf16.mxu0 %v3587_v45  ;;  %v362_v45 = vrot.slane %v4079_v55, %v361_v42 }
 0x180   :  { %2146 = vmatpush1.bf16.msra.mxu0 %v3585_v46  ;;  %v3603_v46 = vld [vmem:[#allocation7 + $0x130] ss:$8 sps:$4 sm:$0xff]  }
 0x181   :  { %2147 = vmatprep.subr.bf16.mxu0 %v3590_v47  ;;  %v3608_v47 = vld [vmem:[#allocation7 + $0x144] ss:$8 sps:$4 sm:$0xff]  }
 0x184   :  { %2148 = vmatpush1.bf16.msra.mxu0 %v3588_v48 }
 0x185   :  { %2149 = vmatprep.subr.bf16.mxu0 %v3593_v49  ;;  %v3606_v49 = vld [vmem:[#allocation7 + $0x140] ss:$8 sps:$4 sm:$0xff]  }
 0x188   :  { %2150 = vmatpush1.bf16.msra.mxu0 %v3591_v50  ;;  %v3611_v50 = vld [vmem:[#allocation7 + $0x154] ss:$8 sps:$4 sm:$0xff]  }
 0x189   :  { %2160 = vmatprep.subr.bf16.mxu0 %v3596_v51 }
 0x21e   :  { %v1512_v61 = vpop.f32.mrb[0].mxu0  ;;  %v1676_v62 = vpop.f32.mrb[0].mxu1 }
 0x21f   :  { %v3201_v63 = vadd.f32 %v1512_v61, %v354_v58  ;;  %v1514_v0 = vpop.f32.mrb[1].mxu0  ;;  %v1678_v1 = vpop.f32.mrb[1].mxu1  ;;  %v3203_v48 = vadd.f32 %v1676_v62, %v362_v45  ;;  %v3615_v61 = vld [vmem:[#allocation7 + $0x170] ss:$8 sps:$4 sm:$0xff]  }
 0x220   :  { %v3202_v2 = vadd.f32 %v1514_v0, %v358_v59  ;;  %v3204_v3 = vadd.f32 %v1678_v1, %v366_v60  ;;  %v1516_v4 = vpop.f32.mrb[2].mxu0  ;;  %v1680_v5 = vpop.f32.mrb[2].mxu1  ;;  %v3612_v59 = vld [vmem:[#allocation7 + $0x160] ss:$8 sps:$4 sm:$0xff]   ;;  %v3617_v60 = vld [vmem:[#allocation7 + $0x174] ss:$8 sps:$4 sm:$0xff]  }
 0x221   :  { %v1683_v6 = vmul.f32 %v3201_v63, %v3201_v63  ;;  %v1517_v7 = vpop.f32.mrb[3].mxu0  ;;  %v1681_v8 = vpop.f32.mrb[3].mxu1  ;;  %v1685_v51 = vmul.f32 %v3203_v48, %v3203_v48  ;;  %v3618_v0 = vld [vmem:[#allocation7 + $0x180] ss:$8 sps:$4 sm:$0xff]   ;;  %v3623_v1 = vld [vmem:[#allocation7 + $0x194] ss:$8 sps:$4 sm:$0xff]  }
 0x222   :  { %v1684_v9 = vmul.f32 %v3202_v2, %v3202_v2  ;;  %v1686_v10 = vmul.f32 %v3204_v3, %v3204_v3  ;;  %v3626_v4 = vld [vmem:[#allocation7 + $0x1a4] ss:$8 sps:$4 sm:$0xff]   ;;  %v3624_v5 = vld [vmem:[#allocation7 + $0x1a0] ss:$8 sps:$4 sm:$0xff]   ;;  %v3627_v7 = vld [vmem:[#allocation7 + $0x1b0] ss:$8 sps:$4 sm:$0xff]  }
 0x223   :  { %v1687_v11 = vmul.f32 %v3201_v63, %v1683_v6  ;;  %v1689_v58 = vmul.f32 %v3203_v48, %v1685_v51  ;;  %v3629_v6 = vld [vmem:[#allocation7 + $0x1b4] ss:$8 sps:$4 sm:$0xff]   ;;  %v3632_v8 = vld [vmem:[#allocation7 + $0x1c4] ss:$8 sps:$4 sm:$0xff]  }
 0x224   :  { %v1688_v12 = vmul.f32 %v3202_v2, %v1684_v9  ;;  %v1690_v13 = vmul.f32 %v3204_v3, %v1686_v10  ;;  %v3630_v9 = vld [vmem:[#allocation7 + $0x1c0] ss:$8 sps:$4 sm:$0xff]   ;;  %v3635_v10 = vld [vmem:[#allocation7 + $0x1d4] ss:$8 sps:$4 sm:$0xff]  }
 0x225   :  { %v1691_v14 = vmul.f32 0.044715, %v1687_v11  ;;  %v1693_v55 = vmul.f32 0.044715, %v1689_v58 }
 0x226   :  { %v1692_v15 = vmul.f32 0.044715, %v1688_v12  ;;  %v1694_v16 = vmul.f32 0.044715, %v1690_v13  ;;  %v3633_v12 = vld [vmem:[#allocation7 + $0x1d0] ss:$8 sps:$4 sm:$0xff]  }
 0x227   :  { %v1695_v17 = vadd.f32 %v3201_v63, %v1691_v14  ;;  %v1697_v62 = vadd.f32 %v3203_v48, %v1693_v55  ;;  %v3638_v13 = vld [vmem:[#allocation7 + $0x1e4] ss:$8 sps:$4 sm:$0xff]  }
 0x228   :  { %v1696_v18 = vadd.f32 %v3202_v2, %v1692_v15  ;;  %v1698_v19 = vadd.f32 %v3204_v3, %v1694_v16  ;;  %v3636_v15 = vld [vmem:[#allocation7 + $0x1e0] ss:$8 sps:$4 sm:$0xff]   ;;  %v3641_v16 = vld [vmem:[#allocation7 + $0x1f4] ss:$8 sps:$4 sm:$0xff]  }
 0x229   :  { %v1699_v20 = vmul.f32 0.7978846, %v1695_v17 }
 0x22a   :  { %v1700_v21 = vmul.f32 0.7978846, %v1696_v18  ;;  %v1702_v22 = vmul.f32 0.7978846, %v1698_v19  ;;  %v3639_v18 = vld [vmem:[#allocation7 + $0x1f0] ss:$8 sps:$4 sm:$0xff]  }
 0x22b   :  { %3682 = vtanh.f32 %v1699_v20 }
 0x22c   :  { %3684 = vtanh.f32 %v1700_v21  ;;  %v3642_v21 = vld [vmem:[#allocation8 + $0x40] sm:$0xff]  }
 0x22d   :  { %3686 = vtanh.f32 %v1702_v22  ;;  %v3643_v22 = vld [vmem:[#allocation8] sm:$0xff]   ;;  %3092 = vmatprep.subr.bf16.mxu1 %v3642_v21 }
 0x22e   :  { %3093 = vmatpush3.bf16.msra.mxu1 %v3643_v22 }
 0x235   :  { %v3683_v23 = vpop.eup %3682 }
 0x236   :  { %v1707_v24 = vadd.f32 1.0, %v3683_v23  ;;  %v3685_v25 = vpop.eup %3684  ;;  %v3644_v23 = vld [vmem:[#allocation8 + $0x48] sm:$0xff]  }
 0x237   :  { %v3687_v26 = vpop.eup %3686  ;;  %v1708_v27 = vadd.f32 1.0, %v3685_v25  ;;  %3094 = vmatprep.subr.bf16.mxu1 %v3644_v23  ;;  %v3646_v25 = vld [vmem:[#allocation8 + $0x50] sm:$0xff]  }
 0x238   :  { %v1711_v28 = vmul.f32 0.5, %v1707_v24  ;;  %v1710_v29 = vadd.f32 1.0, %v3687_v26  ;;  %v3645_v24 = vld [vmem:[#allocation8 + $0x8] sm:$0xff]   ;;  %v3647_v26 = vld [vmem:[#allocation8 + $0x10] sm:$0xff]  }
 0x239   :  { %v1712_v30 = vmul.f32 0.5, %v1708_v27  ;;  %3095 = vmatpush3.bf16.msra.mxu1 %v3645_v24  ;;  %v3648_v27 = vld [vmem:[#allocation8 + $0x58] sm:$0xff]  }
 0x23a   :  { %v1715_v31 = vmul.f32 %v3201_v63, %v1711_v28  ;;  %v1714_v32 = vmul.f32 0.5, %v1710_v29  ;;  %v3620_v63 = vld [vmem:[#allocation7 + $0x184] ss:$8 sps:$4 sm:$0xff]   ;;  %3096 = vmatprep.subr.bf16.mxu1 %v3646_v25  ;;  %v3649_v28 = vld [vmem:[#allocation8 + $0x18] sm:$0xff]  }
 0x23b   :  { %v1716_v33 = vmul.f32 %v3202_v2, %v1712_v30  ;;  %v1701_v2 = vmul.f32 0.7978846, %v1697_v62  ;;  %v3650_v29 = vld [vmem:[#allocation8 + $0x60] sm:$0xff]  }
 0x23c   :  { %v1718_v34 = vmul.f32 %v3204_v3, %v1714_v32  ;;  %v1719_v37 = vpack.c.bf16 %v1715_v31, %v1715_v31  ;;  %v3621_v3 = vld [vmem:[#allocation7 + $0x190] ss:$8 sps:$4 sm:$0xff]   ;;  %v3651_v30 = vld [vmem:[#allocation8 + $0x20] sm:$0xff]   ;;  %v3652_v31 = vld [vmem:[#allocation8 + $0x68] sm:$0xff]  }
 0x23d   :  { %v1720_v35 = vpack.c.bf16 %v1716_v33, %v1716_v33  ;;  %3688 = vtanh.f32 %v1701_v2  ;;  %3097 = vmatpush3.bf16.msra.mxu1 %v3647_v26  ;;  %v3653_v32 = vld [vmem:[#allocation8 + $0x28] sm:$0xff]   ;;  %v3654_v33 = vld [vmem:[#allocation8 + $0x70] sm:$0xff]   ;;  %v3658_v2 = vld [vmem:[#allocation10] sm:$0xff]  }
 0x23e   :  { %v1722_v39 = vpack.c.bf16 %v1718_v34, %v1718_v34  ;;  %3098 = vmatprep.subr.bf16.mxu1 %v3648_v27  ;;  %v3655_v34 = vld [vmem:[#allocation8 + $0x30] sm:$0xff]  }
 0x23f   :  { %2151 = vmatprep.mubr.bf16.mxu0 %v1720_v35  ;;  %v3656_v35 = vld [vmem:[#allocation8 + $0x78] sm:$0xff]  }
 0x240   :  { %2152 = vmatmul.mubr.bf16.vlgmr.msra.gmra.mrb[4].mxu0 %v1719_v37  ;;  %v1787_v37 = vld [vmem:[%s4157_s4] sm:$0x3] }
 0x241   :  { %2161 = vmatpush1.bf16.msra.mxu0 %v3594_v36  ;;  %2192 = vmatprep.mubr.bf16.mxu0 %v1722_v39  ;;  %v3657_v36 = vld [vmem:[#allocation8 + $0x38] sm:$0xff]   ;;  %v1796_v39 = vrot.slane %v1787_v37, %v357_v56 }
 0x242   :  { %2162 = vmatprep.subr.bf16.mxu0 %v3599_v38  ;;  %3099 = vmatpush3.bf16.msra.mxu1 %v3649_v28  ;;  %v1792_v38 = vrot.slane %v1787_v37, %v353_v54  ;;  %v3666_v28 = vld [vmem:[#allocation11] sm:$0xff]  }
 0x243   :  { %3100 = vmatprep.subr.bf16.mxu1 %v3650_v29  ;;  %v3667_v29 = vld [vmem:[#allocation11 + $0x8] sm:$0xff]  }
 0x245   :  { %2163 = vmatpush1.bf16.msra.mxu0 %v3597_v40 }
 0x246   :  { %2164 = vmatprep.subr.bf16.mxu0 %v3602_v41  ;;  %3101 = vmatpush3.bf16.msra.mxu1 %v3651_v30  ;;  %v3668_v30 = vld [vmem:[#allocation11 + $0x10] sm:$0xff]  }
 0x247   :  { %v3689_v11 = vpop.eup %3688  ;;  %3102 = vmatprep.subr.bf16.mxu1 %v3652_v31  ;;  %v3669_v31 = vld [vmem:[#allocation11 + $0x18] sm:$0xff]  }
 0x248   :  { %v1709_v14 = vadd.f32 1.0, %v3689_v11 }
 0x249   :  { %2165 = vmatpush1.bf16.msra.mxu0 %v3600_v43 }
 0x24a   :  { %2166 = vmatprep.subr.bf16.mxu0 %v3605_v44  ;;  %v1713_v17 = vmul.f32 0.5, %v1709_v14  ;;  %3103 = vmatpush3.bf16.msra.mxu1 %v3653_v32  ;;  %v3670_v32 = vld [vmem:[#allocation11 + $0x20] sm:$0xff]  }
 0x24b   :  { %3104 = vmatprep.subr.bf16.mxu1 %v3654_v33  ;;  %v3671_v33 = vld [vmem:[#allocation11 + $0x28] sm:$0xff]  }
 0x24c   :  { %v1717_v19 = vmul.f32 %v3203_v48, %v1713_v17 }
 0x24d   :  { %2167 = vmatpush1.bf16.msra.mxu0 %v3603_v46 }
 0x24e   :  { %2168 = vmatprep.subr.bf16.mxu0 %v3608_v47  ;;  %v1721_v20 = vpack.c.bf16 %v1717_v19, %v1717_v19  ;;  %3105 = vmatpush3.bf16.msra.mxu1 %v3655_v34  ;;  %v3672_v34 = vld [vmem:[#allocation11 + $0x30] sm:$0xff]  }
 0x24f   :  { %3106 = vmatprep.subr.bf16.mxu1 %v3656_v35  ;;  %v3673_v35 = vld [vmem:[#allocation11 + $0x38] sm:$0xff]  }
 0x251   :  { %2169 = vmatpush1.bf16.msra.mxu0 %v3606_v49 }
 0x252   :  { %2170 = vmatprep.subr.bf16.mxu0 %v3611_v50  ;;  %3107 = vmatpush3.bf16.msra.mxu1 %v3657_v36  ;;  %v3064_v36 = vld [vmem:[%s4161_s8] ss:$0 sm:$0xff] }
 0x255   :  { %2171 = vmatpush1.bf16.msra.mxu0 %v3609_v52 }
 0x256   :  { %2172 = vmatprep.subr.bf16.mxu0 %v3614_v57 }
 0x259   :  { %2173 = vmatpush1.bf16.msra.mxu0 %v3612_v59 }
 0x25a   :  { %2174 = vmatprep.subr.bf16.mxu0 %v3617_v60 }
 0x25d   :  { %2175 = vmatpush1.bf16.msra.mxu0 %v3615_v61 }
 0x25e   :  { %2176 = vmatprep.subr.bf16.mxu0 %v3620_v63 }
 0x261   :  { %2177 = vmatpush1.bf16.msra.mxu0 %v3618_v0 }
 0x262   :  { %2178 = vmatprep.subr.bf16.mxu0 %v3623_v1 }
 0x265   :  { %2179 = vmatpush1.bf16.msra.mxu0 %v3621_v3  ;;  %v3904_v3 = vmov 0.0  }
 0x266   :  { %2180 = vmatprep.subr.bf16.mxu0 %v3626_v4  ;;  %3141 = vmatprep.subr.bf16.mxu1 %v3904_v3  ;;  %v3659_v4 = vld [vmem:[#allocation10 + $0x8] sm:$0xff]  }
 0x269   :  { %2181 = vmatpush1.bf16.msra.mxu0 %v3624_v5  ;;  %v3660_v5 = vld [vmem:[#allocation10 + $0x10] sm:$0xff]  }
 0x26a   :  { %2182 = vmatprep.subr.bf16.mxu0 %v3629_v6  ;;  %v3661_v6 = vld [vmem:[#allocation10 + $0x18] sm:$0xff]  }
 0x26d   :  { %2183 = vmatpush1.bf16.msra.mxu0 %v3627_v7  ;;  %v3662_v7 = vld [vmem:[#allocation10 + $0x20] sm:$0xff]  }
 0x26e   :  { %2184 = vmatprep.subr.bf16.mxu0 %v3632_v8  ;;  %v3663_v8 = vld [vmem:[#allocation10 + $0x28] sm:$0xff]  }
 0x271   :  { %2185 = vmatpush1.bf16.msra.mxu0 %v3630_v9  ;;  %v3664_v9 = vld [vmem:[#allocation10 + $0x30] sm:$0xff]  }
 0x272   :  { %2186 = vmatprep.subr.bf16.mxu0 %v3635_v10  ;;  %v3665_v10 = vld [vmem:[#allocation10 + $0x38] sm:$0xff]  }
 0x275   :  { %2187 = vmatpush1.bf16.msra.mxu0 %v3633_v12  ;;  %v3047_v12 = vld [vmem:[%s4159_s6] ss:$0 sm:$0xff] }
 0x276   :  { %2188 = vmatprep.subr.bf16.mxu0 %v3638_v13 }
 0x279   :  { %2189 = vmatpush1.bf16.msra.mxu0 %v3636_v15 }
 0x27a   :  { %2190 = vmatprep.subr.bf16.mxu0 %v3641_v16 }
 0x27d   :  { %2191 = vmatpush1.bf16.msra.mxu0 %v3639_v18 }
 0x280   :  { %2193 = vmatmul.mubr.bf16.vlgmr.msra.gmra.mrb[4].mxu0 %v1721_v20 }
 0x353   :  { %v2194_v40 = vpop.f32.mrb[4].mxu0 }
 0x354   :  { %v3205_v41 = vadd.f32 %v2194_v40, %v1792_v38  ;;  %v2196_v42 = vpop.f32.mrb[5].mxu0 }
 0x355   :  { %v3206_v43 = vadd.f32 %v2196_v42, %v1796_v39  ;;  %v2198_v44 = vpop.f32.mrb[6].mxu0 }
 0x356   :  { %v2201_v45 = vmul.f32 %v3205_v41, %v3205_v41  ;;  %v2199_v46 = vpop.f32.mrb[7].mxu0 }
 0x357   :  { %v2202_v47 = vmul.f32 %v3206_v43, %v3206_v43 }
 0x358   :  { %v2203_v48 = vmul.f32 %v3205_v41, %v2201_v45 }
 0x359   :  { %v2204_v49 = vmul.f32 %v3206_v43, %v2202_v47 }
 0x35a   :  { %v2205_v50 = vmul.f32 0.044715, %v2203_v48 }
 0x35b   :  { %v2206_v51 = vmul.f32 0.044715, %v2204_v49 }
 0x35c   :  { %v2207_v52 = vadd.f32 %v3205_v41, %v2205_v50 }
 0x35d   :  { %v2208_v57 = vadd.f32 %v3206_v43, %v2206_v51 }
 0x35e   :  { %v2209_v58 = vmul.f32 0.7978846, %v2207_v52  ;;  %v3674_v52 = vld [vmem:[#allocation13] sm:$0xff]  }
 0x35f   :  { %v2210_v59 = vmul.f32 0.7978846, %v2208_v57  ;;  %v3675_v57 = vld [vmem:[#allocation13 + $0x8] sm:$0xff]  }
 0x360   :  { %3690 = vtanh.f32 %v2209_v58  ;;  %v3676_v58 = vld [vmem:[#allocation13 + $0x10] sm:$0xff]  }
 0x361   :  { %3692 = vtanh.f32 %v2210_v59  ;;  %v3677_v59 = vld [vmem:[#allocation13 + $0x18] sm:$0xff]  }
 0x36a   :  { %v3691_v53 = vpop.eup %3690 }
 0x36b   :  { %v3693_v54 = vpop.eup %3692  ;;  %v2213_v56 = vadd.f32 1.0, %v3691_v53  ;;  %v3678_v53 = vld [vmem:[#allocation13 + $0x20] sm:$0xff]  }
 0x36c   :  { %v2214_v60 = vadd.f32 1.0, %v3693_v54  ;;  %v3679_v54 = vld [vmem:[#allocation13 + $0x28] sm:$0xff]  }
 0x36d   :  { %v2215_v55 = vmul.f32 0.5, %v2213_v56  ;;  %v3680_v56 = vld [vmem:[#allocation13 + $0x30] sm:$0xff]  }
 0x36e   :  { %v2216_v61 = vmul.f32 0.5, %v2214_v60  ;;  %v3681_v60 = vld [vmem:[#allocation13 + $0x38] sm:$0xff]  }
 0x36f   :  { %v2217_v63 = vmul.f32 %v3205_v41, %v2215_v55  ;;  %v3073_v55 = vld [vmem:[%s4163_s10] ss:$0 sm:$0xff]  ;;  %s3906_s10 = smov [#allocation14]  }
 0x370   :  { %v2218_v62 = vmul.f32 %v3206_v43, %v2216_v61  ;;  %s2773_s5 = sshll.u32 %s3906_s10, 4  ;;  %s2774_s5 = int_to_ptr.vmem [resolvable:$true] %s2773_s5 }
 0x371   :  { %v2219_v1 = vpack.c.bf16 %v2217_v63, %v2217_v63  ;;  %s3858_s23 = scalar_lea.vmem %s2774_s5, 64  ;;  %p3863_p1 = scmp.lt.s32.totalorder %s2774_s5, %s2774_s5 }
 0x372   :  { %v2220_v0 = vpack.c.bf16 %v2218_v62, %v2218_v62  ;;  %p3859_p0 = scmp.ne.s32.totalorder %s2774_s5, %s3858_s23  ;;  %p3864_p2 = scmp.lt.s32.totalorder %s3858_s23, %s3858_s23 }
 0x374   :  { %2388 = vmatprep.mubr.bf16.mxu1 %v2220_v0  ;;  %p3865_p3 = por %p3864_p2, %p3863_p1 }
 0x375   :  { %2389 = vmatmul.mubr.bf16.vlgmr.msra.gmra.mrb[4].mxu1 %v2219_v1 }
 0x376   :  { %3142 = vmatpush3.bf16.msra.mxu1 %v3658_v2  ;;  %3157 = vmatprep.mubr.msk.bf16.mxu1 %vm3905_vm1, %v3904_v3  ;;  %p3866_p4 = pnand %p3865_p3, %p3859_p0 }
 0x377   :  { %3143 = vmatprep.subr.bf16.mxu1 %v3904_v3 }
 0x37a   :  { %3144 = vmatpush3.bf16.msra.mxu1 %v3659_v4 }
 0x37b   :  { %3145 = vmatprep.subr.bf16.mxu1 %v3904_v3 }
 0x37e   :  { %3146 = vmatpush3.bf16.msra.mxu1 %v3660_v5 }
 0x37f   :  { %3147 = vmatprep.subr.bf16.mxu1 %v3904_v3 }
 0x382   :  { %3148 = vmatpush3.bf16.msra.mxu1 %v3661_v6 }
 0x383   :  { %3149 = vmatprep.subr.bf16.mxu1 %v3904_v3 }
 0x386   :  { %3150 = vmatpush3.bf16.msra.mxu1 %v3662_v7 }
 0x387   :  { %3151 = vmatprep.subr.bf16.mxu1 %v3904_v3 }
 0x38a   :  { %3152 = vmatpush3.bf16.msra.mxu1 %v3663_v8 }
 0x38b   :  { %3153 = vmatprep.subr.bf16.mxu1 %v3904_v3 }
 0x38e   :  { %3154 = vmatpush3.bf16.msra.mxu1 %v3664_v9 }
 0x38f   :  { %3155 = vmatprep.subr.bf16.mxu1 %v3904_v3 }
 0x392   :  { %3156 = vmatpush3.bf16.msra.mxu1 %v3665_v10 }
 0x393   :  { %3161 = vmatprep.subr.bf16.mxu1 %v3904_v3 }
 0x448   :  { %v3108_v11 = vpop.f32.mrb[4].mxu1 }
 0x449   :  { %v3109_v13 = vpop.f32.mrb[5].mxu1 }
 0x44a   :  { %v3110_v14 = vadd.f32 %v3109_v13, %v3108_v11  ;;  %v3111_v15 = vpop.f32.mrb[6].mxu1 }
 0x44b   :  { %v3112_v16 = vpop.f32.mrb[7].mxu1 }
 0x44c   :  { %v2391_v17 = vadd.f32 %v3110_v14, %v3047_v12  ;;  %v3082_v12 = vld [vmem:[%s4165_s12] ss:$0 sm:$0xff] }
 0x44e   :  { %v2396_v18 = vmul.f32 %v2391_v17, %v2391_v17 }
 0x450   :  { %v2397_v19 = vmul.f32 %v2396_v18, %v2391_v17 }
 0x452   :  { %v2398_v20 = vmul.f32 0.044715, %v2397_v19 }
 0x454   :  { %v2399_v21 = vadd.f32 %v2398_v20, %v2391_v17 }
 0x456   :  { %v2400_v22 = vmul.f32 0.7978846, %v2399_v21 }
 0x458   :  { %3694 = vtanh.f32 %v2400_v22 }
 0x462   :  { %v3695_v23 = vpop.eup %3694 }
 0x463   :  { %v2402_v24 = vadd.f32 1.0, %v3695_v23 }
 0x465   :  { %v2403_v25 = vmul.f32 0.5, %v2402_v24 }
 0x467   :  { %v2404_v26 = vmul.f32 %v2403_v25, %v2391_v17 }
 0x469   :  { %v2405_v27 = vpack.c.bf16 %v2404_v26, %v2404_v26 }
 0x46b   :  { %3158 = vmatmul.mubr.bf16.vlgmr.msra.gmra.mrb[8].mxu1 %v2405_v27 }
 0x46c   :  { %3177 = vmatprep.mubr.msk.bf16.mxu1 %vm3905_vm1, %v3904_v3  ;;  %3162 = vmatpush3.bf16.msra.mxu1 %v3666_v28 }
 0x46d   :  { %3163 = vmatprep.subr.bf16.mxu1 %v3904_v3 }
 0x470   :  { %3164 = vmatpush3.bf16.msra.mxu1 %v3667_v29 }
 0x471   :  { %3165 = vmatprep.subr.bf16.mxu1 %v3904_v3 }
 0x474   :  { %3166 = vmatpush3.bf16.msra.mxu1 %v3668_v30 }
 0x475   :  { %3167 = vmatprep.subr.bf16.mxu1 %v3904_v3 }
 0x478   :  { %3168 = vmatpush3.bf16.msra.mxu1 %v3669_v31 }
 0x479   :  { %3169 = vmatprep.subr.bf16.mxu1 %v3904_v3 }
 0x47c   :  { %3170 = vmatpush3.bf16.msra.mxu1 %v3670_v32 }
 0x47d   :  { %3171 = vmatprep.subr.bf16.mxu1 %v3904_v3 }
 0x480   :  { %3172 = vmatpush3.bf16.msra.mxu1 %v3671_v33 }
 0x481   :  { %3173 = vmatprep.subr.bf16.mxu1 %v3904_v3 }
 0x484   :  { %3174 = vmatpush3.bf16.msra.mxu1 %v3672_v34 }
 0x485   :  { %3175 = vmatprep.subr.bf16.mxu1 %v3904_v3 }
 0x488   :  { %3176 = vmatpush3.bf16.msra.mxu1 %v3673_v35 }
 0x489   :  { %3181 = vmatprep.subr.bf16.mxu1 %v3904_v3 }
 0x53e   :  { %v2511_v37 = vpop.f32.mrb[8].mxu1 }
 0x53f   :  { %v2512_v38 = vadd.f32 %v3064_v36, %v2511_v37  ;;  %v3159_v39 = vpop.f32.mrb[9].mxu1 }
 0x540   :  { %v2514_v40 = vpop.f32.mrb[10].mxu1 }
 0x541   :  { %v2517_v41 = vmul.f32 %v2512_v38, %v2512_v38  ;;  %v3160_v42 = vpop.f32.mrb[11].mxu1 }
 0x543   :  { %v2518_v43 = vmul.f32 %v2517_v41, %v2512_v38 }
 0x545   :  { %v2519_v44 = vmul.f32 0.044715, %v2518_v43 }
 0x547   :  { %v2520_v45 = vadd.f32 %v2519_v44, %v2512_v38 }
 0x549   :  { %v2521_v46 = vmul.f32 0.7978846, %v2520_v45 }
 0x54b   :  { %3696 = vtanh.f32 %v2521_v46 }
 0x555   :  { %v3697_v47 = vpop.eup %3696 }
 0x556   :  { %v2523_v48 = vadd.f32 1.0, %v3697_v47 }
 0x558   :  { %v2524_v49 = vmul.f32 0.5, %v2523_v48 }
 0x55a   :  { %v2525_v50 = vmul.f32 %v2524_v49, %v2512_v38 }
 0x55c   :  { %v2526_v51 = vpack.c.bf16 %v2525_v50, %v2525_v50 }
 0x55e   :  { %3178 = vmatmul.mubr.bf16.vlgmr.msra.gmra.mrb[12].mxu1 %v2526_v51 }
 0x55f   :  { %3197 = vmatprep.mubr.msk.bf16.mxu1 %vm3905_vm1, %v3904_v3  ;;  %3182 = vmatpush3.bf16.msra.mxu1 %v3674_v52 }
 0x560   :  { %3183 = vmatprep.subr.bf16.mxu1 %v3904_v3 }
 0x563   :  { %3184 = vmatpush3.bf16.msra.mxu1 %v3675_v57 }
 0x564   :  { %3185 = vmatprep.subr.bf16.mxu1 %v3904_v3 }
 0x567   :  { %3186 = vmatpush3.bf16.msra.mxu1 %v3676_v58 }
 0x568   :  { %3187 = vmatprep.subr.bf16.mxu1 %v3904_v3 }
 0x56b   :  { %3188 = vmatpush3.bf16.msra.mxu1 %v3677_v59 }
 0x56c   :  { %3189 = vmatprep.subr.bf16.mxu1 %v3904_v3 }
 0x56f   :  { %3190 = vmatpush3.bf16.msra.mxu1 %v3678_v53 }
 0x570   :  { %3191 = vmatprep.subr.bf16.mxu1 %v3904_v3 }
 0x573   :  { %3192 = vmatpush3.bf16.msra.mxu1 %v3679_v54 }
 0x574   :  { %3193 = vmatprep.subr.bf16.mxu1 %v3904_v3 }
 0x577   :  { %3194 = vmatpush3.bf16.msra.mxu1 %v3680_v56 }
 0x578   :  { %3195 = vmatprep.subr.bf16.mxu1 %v3904_v3 }
 0x57b   :  { %3196 = vmatpush3.bf16.msra.mxu1 %v3681_v60 }
 0x631   :  { %v2632_v61 = vpop.f32.mrb[12].mxu1 }
 0x632   :  { %v2633_v63 = vadd.f32 %v3073_v55, %v2632_v61  ;;  %v3179_v62 = vpop.f32.mrb[13].mxu1 }
 0x633   :  { %v2635_v0 = vpop.f32.mrb[14].mxu1 }
 0x634   :  { %v2638_v1 = vmul.f32 %v2633_v63, %v2633_v63  ;;  %v3180_v2 = vpop.f32.mrb[15].mxu1 }
 0x636   :  { %v2639_v4 = vmul.f32 %v2638_v1, %v2633_v63 }
 0x638   :  { %v2640_v5 = vmul.f32 0.044715, %v2639_v4 }
 0x63a   :  { %v2641_v6 = vadd.f32 %v2640_v5, %v2633_v63 }
 0x63c   :  { %v2642_v7 = vmul.f32 0.7978846, %v2641_v6 }
 0x63e   :  { %3698 = vtanh.f32 %v2642_v7 }
 0x648   :  { %v3699_v8 = vpop.eup %3698 }
 0x649   :  { %v2644_v9 = vadd.f32 1.0, %v3699_v8 }
 0x64b   :  { %v2645_v10 = vmul.f32 0.5, %v2644_v9 }
 0x64d   :  { %v2646_v3 = vmul.f32 %v2645_v10, %v2633_v63 }
 0x64f   :  { %v2647_v11 = vpack.c.bf16 %v2646_v3, %v2646_v3 }
 0x651   :  { %3198 = vmatmul.mubr.bf16.vlgmr.msra.gmra.mrb[16].mxu1 %v2647_v11 }
 0x724   :  { %v2753_v13 = vpop.f32.mrb[16].mxu1 }
 0x725   :  { %v2754_v14 = vadd.f32 %v3082_v12, %v2753_v13  ;;  %v3199_v15 = vpop.f32.mrb[17].mxu1 }
 0x726   :  { %v2756_v16 = vpop.f32.mrb[18].mxu1 }
 0x727   :  { %v3091_v17 = vmul.f32 -1.442695, %v2754_v14  ;;  %v3200_v18 = vpop.f32.mrb[19].mxu1 }
 0x729   :  { %3700 = vpow2.f32 %v3091_v17 }
 0x733   :  { %v3701_v19 = vpop.eup %3700 }
 0x734   :  { %v2762_v20 = vadd.f32 1.0, %v3701_v19 }
 0x736   :  { %3702 = vrcp.f32 %v2762_v20 }
 0x740   :  { %v3703_v21 = vpop.eup %3702 }
 0x741   :  { %v2765_v22 = vpack.c.bf16 %v3703_v21, %v3703_v21 }
 0x743   :  { %2766 = vst [vmem:[#allocation14] sm:$0xf] %v2765_v22 }
 0x744   :  { %3869 = shalt.err (!%p3866_p4)
}
 0x745   :  { %s3870_s3 = scalar_lea.hbm %s4166_s13, 64 }
 0x746   :  { %p3871_p5 = scmp.ne.s32.totalorder %s4166_s13, %s3870_s3  ;;  %p3874_p6 = scmp.lt.u32.totalorder %s3870_s3, %s4166_s13 }
 0x748   :  { %p3876_p7 = pnand %p3874_p6, %p3871_p5 }
 0x74a   :  { %3879 = shalt.err (!%p3876_p7)
}
 0x74b   :  { %2776 = dma.vmem_to_hbm [thread:$0]  %s2774_s5, 64, %s4166_s13, [#allocation4]  }
 0x74c   :  { %3888 = dma.done.wait [#allocation4], 64  }
 0x74d   :  { %3889 = vsyncadd [#allocation4], 4294967232 }
 0x74e   :  { %2780 = vsyncpa [#allocation3], 1 }
 0x74f   :  { %2781 = vsyncpa [#allocation6], 1 }
 0x750   :  { %2782 = vsyncpa [#allocation9], 1 }
 0x751   :  { %2783 = vsyncpa [#allocation12], 1 }
 0x752   :  { %2784 = vsyncpa [#allocation4], 1 }

</bundles_post_ra>
